<compile_context>
chip_gen: v7x
topology: tpu7x:2x2x1
jax: 0.10.0
libtpu: 0.0.40
codegen_flags: <defaults>
</compile_context>

<pallas_src>
import jax
import jax.numpy as jnp
from jax.experimental import pallas as pl
from jax.experimental.pallas import tpu as pltpu

H = 32          # hidden_size
N = 16          # number of nodes
E = 64          # number of edges
X_DIM = 3
POS_DIM = 3
EDGE_DIM = 4
N_LAYERS = 2

LANE = 128      # lane-dense slab width
ENC_K = 16      # zero-padded K for the two encoder matmuls (tile aligned)

# ---- weight slab (bf16, width LANE) row offsets -----------------------------
W_NODE = 0                               # 16 rows: Wn (6,H) zero-padded
W_EDGE = 16                              # 16 rows: Wec = We @ [W1c_0|W1c_1]
W_W1AB = 32                              # per layer H rows: [W1a | W1b]
W_W2 = W_W1AB + N_LAYERS * H             # per layer 2H rows: W2
W_WP = W_W2 + N_LAYERS * 2 * H           # per layer H rows: Wp
W_ROWS = W_WP + N_LAYERS * H             # 288

# ---- vector slab (f32, width LANE) row offsets -------------------------------
V_BN = 0                                 # node-encoder bias (H)
V_BEC = 1                                # folded edge-path bias (L*2H)
V_LAYER = 2                              # 8 rows/layer: g1,be1,b2,g2,be2,bp,gp,bep
V_INVDEG = ((V_LAYER + 8 * N_LAYERS + 7) // 8) * 8   # 24: 1/deg column (N rows)
V_ROWS = V_INVDEG + 16                   # 40

# ---- graph slab (bf16, width LANE) row offsets --------------------------------
G_GATHER = 0                             # rows 0:2E, cols 0:N  -> [gdst ; gsrc-gdst]
G_SCATTER = 2 * E                        # rows 2E:2E+N, cols 0:E -> gdst.T
G_ROWS = 2 * E + N                       # 144


def _layernorm(h, gamma, beta, eps=1e-5):
    mu = jnp.mean(h, axis=-1, keepdims=True)
    var = jnp.mean((h - mu) ** 2, axis=-1, keepdims=True)
    return (h - mu) * jax.lax.rsqrt(var + eps) * gamma + beta


# ---------------- fused Pallas kernel (whole forward) ----------------

def dgcnn_fused_kernel(act_ref, g_ref, w_ref, v_ref, o_ref):
    f32, bf16 = jnp.float32, jnp.bfloat16

    # node encoder: one matmul over K padded to 16 with zeros on both operands
    h = (jnp.dot(act_ref[0:N, 0:ENC_K].astype(bf16),
                 w_ref[W_NODE:W_NODE + ENC_K, 0:H],
                 preferred_element_type=f32)
         + v_ref[V_BN:V_BN + 1, 0:H])                                   # (N, H)

    # edge path, hoisted out of the layer loop; We and both layers' W1c are
    # folded host-side, so this is a single lane-dense matmul for all layers.
    eap = (jnp.dot(act_ref[N:N + E, 0:ENC_K].astype(bf16),
                   w_ref[W_EDGE:W_EDGE + ENC_K, 0:N_LAYERS * 2 * H],
                   preferred_element_type=f32)
           + v_ref[V_BEC:V_BEC + 1, 0:N_LAYERS * 2 * H])                # (E, L*2H)

    inv_deg = v_ref[V_INVDEG:V_INVDEG + N, 0:1]                         # (N, 1) f32

    for l in range(N_LAYERS):                        # unrolled in-kernel loop
        w1r = W_W1AB + l * H
        w2r = W_W2 + l * 2 * H
        wpr = W_WP + l * H
        vr = V_LAYER + l * 8

        # node-side projection: hp = h @ [W1a | W1b]   (N,H)@(H,4H), lane dense
        hp = jnp.dot(h.astype(bf16), w_ref[w1r:w1r + H, 0:4 * H],
                     preferred_element_type=f32)                        # (N, 4H)
        # both gathers in one (2E,N)@(N,4H) matmul:
        #   rows 0:E   -> gdst      @ hp   (x_i side)
        #   rows E:2E  -> (gsrc-gdst)@ hp  ((x_j - x_i) side)
        gh = jnp.dot(g_ref[G_GATHER:G_GATHER + 2 * E, 0:N], hp.astype(bf16),
                     preferred_element_type=f32)                        # (2E, 4H)
        m = (gh[0:E, 0:2 * H] + gh[E:2 * E, 2 * H:4 * H]
             + eap[:, l * 2 * H:(l + 1) * 2 * H])                       # (E, 2H)

        # msg MLP: LN -> ReLU -> Linear(2H,H) -> LN -> ReLU
        m = jnp.maximum(_layernorm(m, v_ref[vr:vr + 1, 0:2 * H],
                                   v_ref[vr + 1:vr + 2, 0:2 * H]), 0.0)
        m = (jnp.dot(m.astype(bf16), w_ref[w2r:w2r + 2 * H, 0:H],
                     preferred_element_type=f32)
             + v_ref[vr + 2:vr + 3, 0:H])
        m = jnp.maximum(_layernorm(m, v_ref[vr + 3:vr + 4, 0:H],
                                   v_ref[vr + 4:vr + 5, 0:H]), 0.0)     # (E, H)

        # mean aggregation: binary gdst.T matmul (exact in bf16), 1/deg in f32
        agg = jnp.dot(g_ref[G_SCATTER:G_SCATTER + N, 0:E], m.astype(bf16),
                      preferred_element_type=f32) * inv_deg             # (N, H)

        # post_nn Linear(H,H) -> LN -> ReLU, residual add (dropout = identity)
        p = (jnp.dot(agg.astype(bf16), w_ref[wpr:wpr + H, 0:H],
                     preferred_element_type=f32)
             + v_ref[vr + 5:vr + 6, 0:H])
        p = jnp.maximum(_layernorm(p, v_ref[vr + 6:vr + 7, 0:H],
                                   v_ref[vr + 7:vr + 8, 0:H]), 0.0)
        h = p + h

    o_ref[...] = h


@jax.jit
def dgcnn_forward(x, pos, edge_attr, gslab, wslab, vslab):
    # One zero-padded f32 activation slab (x|pos for nodes, edge_attr for edges).
    act = jnp.zeros((N + E, LANE), jnp.float32)
    act = act.at[0:N, 0:X_DIM].set(x)
    act = act.at[0:N, X_DIM:X_DIM + POS_DIM].set(pos)
    act = act.at[N:N + E, 0:EDGE_DIM].set(edge_attr)
    return pl.pallas_call(
        dgcnn_fused_kernel,
        out_shape=jax.ShapeDtypeStruct((N, H), jnp.float32),
        in_specs=[pl.BlockSpec(memory_space=pltpu.MemorySpace.VMEM)] * 4,
        out_specs=pl.BlockSpec(memory_space=pltpu.MemorySpace.VMEM),
        compiler_params=pltpu.CompilerParams(vmem_limit_bytes=32 << 20),
    )(act, gslab, wslab, vslab)


# ---------------- graph-structure slab (built ONCE, not per forward) --------

def build_graph_slab(edge_index, n):
    src = edge_index[0]            # j (source)
    dst = edge_index[1]            # i (target), flow='source_to_target'
    nodes = jnp.arange(n)
    gsrc = (src[:, None] == nodes[None, :]).astype(jnp.float32)    # (E, N)
    gdst = (dst[:, None] == nodes[None, :]).astype(jnp.float32)    # (E, N)
    g = jnp.zeros((G_ROWS, LANE), jnp.float32)
    g = g.at[G_GATHER:G_GATHER + E, 0:n].set(gdst)
    g = g.at[G_GATHER + E:G_GATHER + 2 * E, 0:n].set(gsrc - gdst)
    g = g.at[G_SCATTER:G_SCATTER + n, 0:E].set(gdst.T)
    deg = gdst.sum(axis=0)
    inv_deg = 1.0 / jnp.maximum(deg, 1.0)                          # (N,) f32
    return g.astype(jnp.bfloat16), inv_deg


# ---------------- parameters: raw (module layout) + packed slabs ------------

def init_raw_params(key):
    keys = iter(jax.random.split(key, 4 + 3 * N_LAYERS))

    def lin_w(k, fi, fo):
        return jax.random.normal(k, (fi, fo), jnp.float32) / jnp.sqrt(float(fi))

    raw = dict(
        wn=lin_w(next(keys), X_DIM + POS_DIM, H), bn=jnp.zeros((H,), jnp.float32),
        we=lin_w(next(keys), EDGE_DIM, H), be=jnp.zeros((H,), jnp.float32),
        w1=[], b1=[], g1=[], be1=[], w2=[], b2=[], g2=[], be2=[],
        wp=[], bp=[], gp=[], bep=[],
    )
    for _ in range(N_LAYERS):
        raw["w1"].append(lin_w(next(keys), 3 * H, 2 * H))
        raw["b1"].append(jnp.zeros((2 * H,), jnp.float32))
        raw["g1"].append(jnp.ones((2 * H,), jnp.float32))
        raw["be1"].append(jnp.zeros((2 * H,), jnp.float32))
        raw["w2"].append(lin_w(next(keys), 2 * H, H))
        raw["b2"].append(jnp.zeros((H,), jnp.float32))
        raw["g2"].append(jnp.ones((H,), jnp.float32))
        raw["be2"].append(jnp.zeros((H,), jnp.float32))
        raw["wp"].append(lin_w(next(keys), H, H))
        raw["bp"].append(jnp.zeros((H,), jnp.float32))
        raw["gp"].append(jnp.ones((H,), jnp.float32))
        raw["bep"].append(jnp.zeros((H,), jnp.float32))
    return raw


def pack_params(raw, inv_deg):
    """Fold + pack everything into one bf16 weight slab and one f32 vector slab."""
    w = jnp.zeros((W_ROWS, LANE), jnp.float32)
    w = w.at[W_NODE:W_NODE + X_DIM + POS_DIM, 0:H].set(raw["wn"])
    # fold edge encoder into both layers' W1c block: (EDGE_DIM, L*2H)
    w1c_all = jnp.concatenate([raw["w1"][l][2 * H:3 * H, :]
                               for l in range(N_LAYERS)], axis=1)   # (H, L*2H)
    wec = raw["we"] @ w1c_all
    w = w.at[W_EDGE:W_EDGE + EDGE_DIM, 0:N_LAYERS * 2 * H].set(wec)
    for l in range(N_LAYERS):
        w1 = raw["w1"][l]
        w1ab = jnp.concatenate([w1[0:H, :], w1[H:2 * H, :]], axis=1)  # (H, 4H)
        w = w.at[W_W1AB + l * H:W_W1AB + (l + 1) * H, 0:4 * H].set(w1ab)
        w = w.at[W_W2 + l * 2 * H:W_W2 + (l + 1) * 2 * H, 0:H].set(raw["w2"][l])
        w = w.at[W_WP + l * H:W_WP + (l + 1) * H, 0:H].set(raw["wp"][l])
    wslab = w.astype(jnp.bfloat16)

    v = jnp.zeros((V_ROWS, LANE), jnp.float32)
    v = v.at[V_BN, 0:H].set(raw["bn"])
    bec = raw["be"] @ w1c_all + jnp.concatenate(raw["b1"])            # (L*2H,)
    v = v.at[V_BEC, 0:N_LAYERS * 2 * H].set(bec)
    for l in range(N_LAYERS):
        r = V_LAYER + 8 * l
        v = v.at[r + 0, 0:2 * H].set(raw["g1"][l])
        v = v.at[r + 1, 0:2 * H].set(raw["be1"][l])
        v = v.at[r + 2, 0:H].set(raw["b2"][l])
        v = v.at[r + 3, 0:H].set(raw["g2"][l])
        v = v.at[r + 4, 0:H].set(raw["be2"][l])
        v = v.at[r + 5, 0:H].set(raw["bp"][l])
        v = v.at[r + 6, 0:H].set(raw["gp"][l])
        v = v.at[r + 7, 0:H].set(raw["bep"][l])
    v = v.at[V_INVDEG:V_INVDEG + N, 0].set(inv_deg)
    return wslab, v


# ---------------- pure-JAX reference (for correctness check) ----------------

def reference_forward(raw, x, pos, edge_attr, edge_index):
    src, dst = edge_index[0], edge_index[1]

    def ln(h, g, b, eps=1e-5):
        mu = h.mean(-1, keepdims=True)
        var = ((h - mu) ** 2).mean(-1, keepdims=True)
        return (h - mu) / jnp.sqrt(var + eps) * g + b

    h = jnp.concatenate([x, pos], axis=1) @ raw["wn"] + raw["bn"]
    ea = edge_attr @ raw["we"] + raw["be"]
    for l in range(N_LAYERS):
        x_i, x_j = h[dst], h[src]
        m = jnp.concatenate([x_i, x_j - x_i, ea], 1) @ raw["w1"][l] + raw["b1"][l]
        m = jax.nn.relu(ln(m, raw["g1"][l], raw["be1"][l]))
        m = m @ raw["w2"][l] + raw["b2"][l]
        m = jax.nn.relu(ln(m, raw["g2"][l], raw["be2"][l]))
        agg = jnp.zeros((N, H), jnp.float32).at[dst].add(m)
        deg = jnp.zeros((N,), jnp.float32).at[dst].add(1.0)
        agg = agg / jnp.maximum(deg, 1.0)[:, None]
        p = agg @ raw["wp"][l] + raw["bp"][l]
        p = jax.nn.relu(ln(p, raw["gp"][l], raw["bep"][l]))
        h = p + h
    return h


if __name__ == "__main__":
    key = jax.random.PRNGKey(0)
    k_param, k_x, k_pos, k_ea, k_src, k_dst = jax.random.split(key, 6)

    raw = init_raw_params(k_param)
    x = jax.random.normal(k_x, (N, X_DIM), jnp.float32)
    pos = jax.random.normal(k_pos, (N, POS_DIM), jnp.float32)
    edge_attr = jax.random.normal(k_ea, (E, EDGE_DIM), jnp.float32)
    edge_index = jnp.stack([
        jax.random.randint(k_src, (E,), 0, N),
        jax.random.randint(k_dst, (E,), 0, N),
    ], axis=0).astype(jnp.int32)

    # Graph structure and parameter slabs built ONCE, outside the hot path.
    gslab, inv_deg = build_graph_slab(edge_index, N)
    wslab, vslab = pack_params(raw, inv_deg)
    gslab, wslab, vslab = jax.block_until_ready((gslab, wslab, vslab))

    out = dgcnn_forward(x, pos, edge_attr, gslab, wslab, vslab)
    out = jax.block_until_ready(out)
    ref = reference_forward(raw, x, pos, edge_attr, edge_index)

    assert out.shape == (N, H)
    assert jnp.all(jnp.isfinite(out))
    assert jnp.allclose(out, ref, atol=1e-1, rtol=1e-1), \
        float(jnp.max(jnp.abs(out - ref)))
    print("KERNEL_OK")
</pallas_src>

<mosaic_0001>
module attributes {stable_mosaic.version = 11 : i64} {
  func.func @dgcnn_fused_kernel(%arg0: memref<80x128xf32, #tpu.memory_space<vmem>>, %arg1: memref<144x128xbf16, #tpu.memory_space<vmem>>, %arg2: memref<288x128xbf16, #tpu.memory_space<vmem>>, %arg3: memref<40x128xf32, #tpu.memory_space<vmem>>, %arg4: memref<16x32xf32, #tpu.memory_space<vmem>>) attributes {dimension_semantics = [], scalar_prefetch = 0 : i64, scratch_operands = 0 : i64, tpu.core_type = #tpu.core_type<tc>} {
    %c0 = arith.constant 0 : index
    %c0_0 = arith.constant 0 : index
    %0 = vector.load %arg0[%c0, %c0_0] : memref<80x128xf32, #tpu.memory_space<vmem>>, vector<16x16xf32>
    %1 = arith.truncf %0 : vector<16x16xf32> to vector<16x16xbf16>
    %c0_1 = arith.constant 0 : index
    %c0_2 = arith.constant 0 : index
    %2 = vector.load %arg2[%c0_1, %c0_2] : memref<288x128xbf16, #tpu.memory_space<vmem>>, vector<16x32xbf16>
    %cst = arith.constant dense<0.000000e+00> : vector<16x32xf32>
    %3 = tpu.matmul %1, %2, %cst {dimension_numbers = #tpu.dot_dimension_numbers<[1], [0], [0], [1], [0, 0, 1, 1], [], []>} : vector<16x16xbf16>, vector<16x32xbf16>, vector<16x32xf32> -> vector<16x32xf32>
    %c0_3 = arith.constant 0 : index
    %c0_4 = arith.constant 0 : index
    %4 = vector.load %arg3[%c0_3, %c0_4] : memref<40x128xf32, #tpu.memory_space<vmem>>, vector<1x32xf32>
    %5 = vector.broadcast %4 : vector<1x32xf32> to vector<16x32xf32>
    %6 = arith.addf %3, %5 : vector<16x32xf32>
    %c16 = arith.constant 16 : index
    %c0_5 = arith.constant 0 : index
    %7 = vector.load %arg0[%c16, %c0_5] : memref<80x128xf32, #tpu.memory_space<vmem>>, vector<64x16xf32>
    %8 = arith.truncf %7 : vector<64x16xf32> to vector<64x16xbf16>
    %c16_6 = arith.constant 16 : index
    %c0_7 = arith.constant 0 : index
    %9 = vector.load %arg2[%c16_6, %c0_7] : memref<288x128xbf16, #tpu.memory_space<vmem>>, vector<16x128xbf16>
    %cst_8 = arith.constant dense<0.000000e+00> : vector<64x128xf32>
    %10 = tpu.matmul %8, %9, %cst_8 {dimension_numbers = #tpu.dot_dimension_numbers<[1], [0], [0], [1], [0, 0, 1, 1], [], []>} : vector<64x16xbf16>, vector<16x128xbf16>, vector<64x128xf32> -> vector<64x128xf32>
    %c1 = arith.constant 1 : index
    %c0_9 = arith.constant 0 : index
    %11 = vector.load %arg3[%c1, %c0_9] : memref<40x128xf32, #tpu.memory_space<vmem>>, vector<1x128xf32>
    %12 = vector.broadcast %11 : vector<1x128xf32> to vector<64x128xf32>
    %13 = arith.addf %10, %12 : vector<64x128xf32>
    %c24 = arith.constant 24 : index
    %c0_10 = arith.constant 0 : index
    %14 = vector.load %arg3[%c24, %c0_10] : memref<40x128xf32, #tpu.memory_space<vmem>>, vector<16x1xf32>
    %15 = arith.truncf %6 : vector<16x32xf32> to vector<16x32xbf16>
    %c32 = arith.constant 32 : index
    %c0_11 = arith.constant 0 : index
    %16 = vector.load %arg2[%c32, %c0_11] : memref<288x128xbf16, #tpu.memory_space<vmem>>, vector<32x128xbf16>
    %cst_12 = arith.constant dense<0.000000e+00> : vector<16x128xf32>
    %17 = tpu.matmul %15, %16, %cst_12 {dimension_numbers = #tpu.dot_dimension_numbers<[1], [0], [0], [1], [0, 0, 1, 1], [], []>} : vector<16x32xbf16>, vector<32x128xbf16>, vector<16x128xf32> -> vector<16x128xf32>
    %c0_13 = arith.constant 0 : index
    %c0_14 = arith.constant 0 : index
    %18 = vector.load %arg1[%c0_13, %c0_14] : memref<144x128xbf16, #tpu.memory_space<vmem>>, vector<128x16xbf16>
    %19 = arith.truncf %17 : vector<16x128xf32> to vector<16x128xbf16>
    %cst_15 = arith.constant dense<0.000000e+00> : vector<128x128xf32>
    %20 = tpu.matmul %18, %19, %cst_15 {dimension_numbers = #tpu.dot_dimension_numbers<[1], [0], [0], [1], [0, 0, 1, 1], [], []>} : vector<128x16xbf16>, vector<16x128xbf16>, vector<128x128xf32> -> vector<128x128xf32>
    %21 = vector.extract_strided_slice %20 {offsets = [0, 0], sizes = [64, 64], strides = [1, 1]} : vector<128x128xf32> to vector<64x64xf32>
    %22 = vector.extract_strided_slice %20 {offsets = [64, 64], sizes = [64, 64], strides = [1, 1]} : vector<128x128xf32> to vector<64x64xf32>
    %23 = arith.addf %21, %22 : vector<64x64xf32>
    %24 = vector.extract_strided_slice %13 {offsets = [0, 0], sizes = [64, 64], strides = [1, 1]} : vector<64x128xf32> to vector<64x64xf32>
    %25 = arith.addf %23, %24 : vector<64x64xf32>
    %c2 = arith.constant 2 : index
    %c0_16 = arith.constant 0 : index
    %26 = vector.load %arg3[%c2, %c0_16] : memref<40x128xf32, #tpu.memory_space<vmem>>, vector<1x64xf32>
    %c3 = arith.constant 3 : index
    %c0_17 = arith.constant 0 : index
    %27 = vector.load %arg3[%c3, %c0_17] : memref<40x128xf32, #tpu.memory_space<vmem>>, vector<1x64xf32>
    %cst_18 = arith.constant dense<0.000000e+00> : vector<64xf32>
    %28 = vector.multi_reduction <add>, %25, %cst_18 [1] : vector<64x64xf32> to vector<64xf32>
    %29 = vector.shape_cast %28 : vector<64xf32> to vector<64x1xf32>
    %cst_19 = arith.constant 6.400000e+01 : f32
    %30 = vector.broadcast %cst_19 : f32 to vector<64x1xf32>
    %31 = arith.divf %29, %30 : vector<64x1xf32>
    %32 = vector.broadcast %31 : vector<64x1xf32> to vector<64x64xf32>
    %33 = arith.subf %25, %32 : vector<64x64xf32>
    %34 = arith.mulf %33, %33 : vector<64x64xf32>
    %cst_20 = arith.constant dense<0.000000e+00> : vector<64xf32>
    %35 = vector.multi_reduction <add>, %34, %cst_20 [1] : vector<64x64xf32> to vector<64xf32>
    %36 = vector.shape_cast %35 : vector<64xf32> to vector<64x1xf32>
    %cst_21 = arith.constant 6.400000e+01 : f32
    %37 = vector.broadcast %cst_21 : f32 to vector<64x1xf32>
    %38 = arith.divf %36, %37 : vector<64x1xf32>
    %39 = vector.broadcast %31 : vector<64x1xf32> to vector<64x64xf32>
    %40 = arith.subf %25, %39 : vector<64x64xf32>
    %cst_22 = arith.constant 9.99999974E-6 : f32
    %41 = vector.broadcast %cst_22 : f32 to vector<64x1xf32>
    %42 = arith.addf %38, %41 : vector<64x1xf32>
    %43 = math.rsqrt %42 : vector<64x1xf32>
    %44 = vector.broadcast %43 : vector<64x1xf32> to vector<64x64xf32>
    %45 = arith.mulf %40, %44 : vector<64x64xf32>
    %46 = vector.broadcast %26 : vector<1x64xf32> to vector<64x64xf32>
    %47 = arith.mulf %45, %46 : vector<64x64xf32>
    %48 = vector.broadcast %27 : vector<1x64xf32> to vector<64x64xf32>
    %49 = arith.addf %47, %48 : vector<64x64xf32>
    %cst_23 = arith.constant 0.000000e+00 : f32
    %50 = vector.broadcast %cst_23 : f32 to vector<64x64xf32>
    %51 = arith.maximumf %49, %50 : vector<64x64xf32>
    %52 = arith.truncf %51 : vector<64x64xf32> to vector<64x64xbf16>
    %c96 = arith.constant 96 : index
    %c0_24 = arith.constant 0 : index
    %53 = vector.load %arg2[%c96, %c0_24] : memref<288x128xbf16, #tpu.memory_space<vmem>>, vector<64x32xbf16>
    %cst_25 = arith.constant dense<0.000000e+00> : vector<64x32xf32>
    %54 = tpu.matmul %52, %53, %cst_25 {dimension_numbers = #tpu.dot_dimension_numbers<[1], [0], [0], [1], [0, 0, 1, 1], [], []>} : vector<64x64xbf16>, vector<64x32xbf16>, vector<64x32xf32> -> vector<64x32xf32>
    %c4 = arith.constant 4 : index
    %c0_26 = arith.constant 0 : index
    %55 = vector.load %arg3[%c4, %c0_26] : memref<40x128xf32, #tpu.memory_space<vmem>>, vector<1x32xf32>
    %56 = vector.broadcast %55 : vector<1x32xf32> to vector<64x32xf32>
    %57 = arith.addf %54, %56 : vector<64x32xf32>
    %c5 = arith.constant 5 : index
    %c0_27 = arith.constant 0 : index
    %58 = vector.load %arg3[%c5, %c0_27] : memref<40x128xf32, #tpu.memory_space<vmem>>, vector<1x32xf32>
    %c6 = arith.constant 6 : index
    %c0_28 = arith.constant 0 : index
    %59 = vector.load %arg3[%c6, %c0_28] : memref<40x128xf32, #tpu.memory_space<vmem>>, vector<1x32xf32>
    %cst_29 = arith.constant dense<0.000000e+00> : vector<64xf32>
    %60 = vector.multi_reduction <add>, %57, %cst_29 [1] : vector<64x32xf32> to vector<64xf32>
    %61 = vector.shape_cast %60 : vector<64xf32> to vector<64x1xf32>
    %cst_30 = arith.constant 3.200000e+01 : f32
    %62 = vector.broadcast %cst_30 : f32 to vector<64x1xf32>
    %63 = arith.divf %61, %62 : vector<64x1xf32>
    %64 = vector.broadcast %63 : vector<64x1xf32> to vector<64x32xf32>
    %65 = arith.subf %57, %64 : vector<64x32xf32>
    %66 = arith.mulf %65, %65 : vector<64x32xf32>
    %cst_31 = arith.constant dense<0.000000e+00> : vector<64xf32>
    %67 = vector.multi_reduction <add>, %66, %cst_31 [1] : vector<64x32xf32> to vector<64xf32>
    %68 = vector.shape_cast %67 : vector<64xf32> to vector<64x1xf32>
    %cst_32 = arith.constant 3.200000e+01 : f32
    %69 = vector.broadcast %cst_32 : f32 to vector<64x1xf32>
    %70 = arith.divf %68, %69 : vector<64x1xf32>
    %71 = vector.broadcast %63 : vector<64x1xf32> to vector<64x32xf32>
    %72 = arith.subf %57, %71 : vector<64x32xf32>
    %cst_33 = arith.constant 9.99999974E-6 : f32
    %73 = vector.broadcast %cst_33 : f32 to vector<64x1xf32>
    %74 = arith.addf %70, %73 : vector<64x1xf32>
    %75 = math.rsqrt %74 : vector<64x1xf32>
    %76 = vector.broadcast %75 : vector<64x1xf32> to vector<64x32xf32>
    %77 = arith.mulf %72, %76 : vector<64x32xf32>
    %78 = vector.broadcast %58 : vector<1x32xf32> to vector<64x32xf32>
    %79 = arith.mulf %77, %78 : vector<64x32xf32>
    %80 = vector.broadcast %59 : vector<1x32xf32> to vector<64x32xf32>
    %81 = arith.addf %79, %80 : vector<64x32xf32>
    %cst_34 = arith.constant 0.000000e+00 : f32
    %82 = vector.broadcast %cst_34 : f32 to vector<64x32xf32>
    %83 = arith.maximumf %81, %82 : vector<64x32xf32>
    %c128 = arith.constant 128 : index
    %c0_35 = arith.constant 0 : index
    %84 = vector.load %arg1[%c128, %c0_35] : memref<144x128xbf16, #tpu.memory_space<vmem>>, vector<16x64xbf16>
    %85 = arith.truncf %83 : vector<64x32xf32> to vector<64x32xbf16>
    %cst_36 = arith.constant dense<0.000000e+00> : vector<16x32xf32>
    %86 = tpu.matmul %84, %85, %cst_36 {dimension_numbers = #tpu.dot_dimension_numbers<[1], [0], [0], [1], [0, 0, 1, 1], [], []>} : vector<16x64xbf16>, vector<64x32xbf16>, vector<16x32xf32> -> vector<16x32xf32>
    %87 = vector.broadcast %14 : vector<16x1xf32> to vector<16x32xf32>
    %88 = arith.mulf %86, %87 : vector<16x32xf32>
    %89 = arith.truncf %88 : vector<16x32xf32> to vector<16x32xbf16>
    %c224 = arith.constant 224 : index
    %c0_37 = arith.constant 0 : index
    %90 = vector.load %arg2[%c224, %c0_37] : memref<288x128xbf16, #tpu.memory_space<vmem>>, vector<32x32xbf16>
    %cst_38 = arith.constant dense<0.000000e+00> : vector<16x32xf32>
    %91 = tpu.matmul %89, %90, %cst_38 {dimension_numbers = #tpu.dot_dimension_numbers<[1], [0], [0], [1], [0, 0, 1, 1], [], []>} : vector<16x32xbf16>, vector<32x32xbf16>, vector<16x32xf32> -> vector<16x32xf32>
    %c7 = arith.constant 7 : index
    %c0_39 = arith.constant 0 : index
    %92 = vector.load %arg3[%c7, %c0_39] : memref<40x128xf32, #tpu.memory_space<vmem>>, vector<1x32xf32>
    %93 = vector.broadcast %92 : vector<1x32xf32> to vector<16x32xf32>
    %94 = arith.addf %91, %93 : vector<16x32xf32>
    %c8 = arith.constant 8 : index
    %c0_40 = arith.constant 0 : index
    %95 = vector.load %arg3[%c8, %c0_40] : memref<40x128xf32, #tpu.memory_space<vmem>>, vector<1x32xf32>
    %c9 = arith.constant 9 : index
    %c0_41 = arith.constant 0 : index
    %96 = vector.load %arg3[%c9, %c0_41] : memref<40x128xf32, #tpu.memory_space<vmem>>, vector<1x32xf32>
    %cst_42 = arith.constant dense<0.000000e+00> : vector<16xf32>
    %97 = vector.multi_reduction <add>, %94, %cst_42 [1] : vector<16x32xf32> to vector<16xf32>
    %98 = vector.shape_cast %97 : vector<16xf32> to vector<16x1xf32>
    %cst_43 = arith.constant 3.200000e+01 : f32
    %99 = vector.broadcast %cst_43 : f32 to vector<16x1xf32>
    %100 = arith.divf %98, %99 : vector<16x1xf32>
    %101 = vector.broadcast %100 : vector<16x1xf32> to vector<16x32xf32>
    %102 = arith.subf %94, %101 : vector<16x32xf32>
    %103 = arith.mulf %102, %102 : vector<16x32xf32>
    %cst_44 = arith.constant dense<0.000000e+00> : vector<16xf32>
    %104 = vector.multi_reduction <add>, %103, %cst_44 [1] : vector<16x32xf32> to vector<16xf32>
    %105 = vector.shape_cast %104 : vector<16xf32> to vector<16x1xf32>
    %cst_45 = arith.constant 3.200000e+01 : f32
    %106 = vector.broadcast %cst_45 : f32 to vector<16x1xf32>
    %107 = arith.divf %105, %106 : vector<16x1xf32>
    %108 = vector.broadcast %100 : vector<16x1xf32> to vector<16x32xf32>
    %109 = arith.subf %94, %108 : vector<16x32xf32>
    %cst_46 = arith.constant 9.99999974E-6 : f32
    %110 = vector.broadcast %cst_46 : f32 to vector<16x1xf32>
    %111 = arith.addf %107, %110 : vector<16x1xf32>
    %112 = math.rsqrt %111 : vector<16x1xf32>
    %113 = vector.broadcast %112 : vector<16x1xf32> to vector<16x32xf32>
    %114 = arith.mulf %109, %113 : vector<16x32xf32>
    %115 = vector.broadcast %95 : vector<1x32xf32> to vector<16x32xf32>
    %116 = arith.mulf %114, %115 : vector<16x32xf32>
    %117 = vector.broadcast %96 : vector<1x32xf32> to vector<16x32xf32>
    %118 = arith.addf %116, %117 : vector<16x32xf32>
    %cst_47 = arith.constant 0.000000e+00 : f32
    %119 = vector.broadcast %cst_47 : f32 to vector<16x32xf32>
    %120 = arith.maximumf %118, %119 : vector<16x32xf32>
    %121 = arith.addf %120, %6 : vector<16x32xf32>
    %122 = arith.truncf %121 : vector<16x32xf32> to vector<16x32xbf16>
    %c64 = arith.constant 64 : index
    %c0_48 = arith.constant 0 : index
    %123 = vector.load %arg2[%c64, %c0_48] : memref<288x128xbf16, #tpu.memory_space<vmem>>, vector<32x128xbf16>
    %cst_49 = arith.constant dense<0.000000e+00> : vector<16x128xf32>
    %124 = tpu.matmul %122, %123, %cst_49 {dimension_numbers = #tpu.dot_dimension_numbers<[1], [0], [0], [1], [0, 0, 1, 1], [], []>} : vector<16x32xbf16>, vector<32x128xbf16>, vector<16x128xf32> -> vector<16x128xf32>
    %c0_50 = arith.constant 0 : index
    %c0_51 = arith.constant 0 : index
    %125 = vector.load %arg1[%c0_50, %c0_51] : memref<144x128xbf16, #tpu.memory_space<vmem>>, vector<128x16xbf16>
    %126 = arith.truncf %124 : vector<16x128xf32> to vector<16x128xbf16>
    %cst_52 = arith.constant dense<0.000000e+00> : vector<128x128xf32>
    %127 = tpu.matmul %125, %126, %cst_52 {dimension_numbers = #tpu.dot_dimension_numbers<[1], [0], [0], [1], [0, 0, 1, 1], [], []>} : vector<128x16xbf16>, vector<16x128xbf16>, vector<128x128xf32> -> vector<128x128xf32>
    %128 = vector.extract_strided_slice %127 {offsets = [0, 0], sizes = [64, 64], strides = [1, 1]} : vector<128x128xf32> to vector<64x64xf32>
    %129 = vector.extract_strided_slice %127 {offsets = [64, 64], sizes = [64, 64], strides = [1, 1]} : vector<128x128xf32> to vector<64x64xf32>
    %130 = arith.addf %128, %129 : vector<64x64xf32>
    %131 = vector.extract_strided_slice %13 {offsets = [0, 64], sizes = [64, 64], strides = [1, 1]} : vector<64x128xf32> to vector<64x64xf32>
    %132 = arith.addf %130, %131 : vector<64x64xf32>
    %c10 = arith.constant 10 : index
    %c0_53 = arith.constant 0 : index
    %133 = vector.load %arg3[%c10, %c0_53] : memref<40x128xf32, #tpu.memory_space<vmem>>, vector<1x64xf32>
    %c11 = arith.constant 11 : index
    %c0_54 = arith.constant 0 : index
    %134 = vector.load %arg3[%c11, %c0_54] : memref<40x128xf32, #tpu.memory_space<vmem>>, vector<1x64xf32>
    %cst_55 = arith.constant dense<0.000000e+00> : vector<64xf32>
    %135 = vector.multi_reduction <add>, %132, %cst_55 [1] : vector<64x64xf32> to vector<64xf32>
    %136 = vector.shape_cast %135 : vector<64xf32> to vector<64x1xf32>
    %cst_56 = arith.constant 6.400000e+01 : f32
    %137 = vector.broadcast %cst_56 : f32 to vector<64x1xf32>
    %138 = arith.divf %136, %137 : vector<64x1xf32>
    %139 = vector.broadcast %138 : vector<64x1xf32> to vector<64x64xf32>
    %140 = arith.subf %132, %139 : vector<64x64xf32>
    %141 = arith.mulf %140, %140 : vector<64x64xf32>
    %cst_57 = arith.constant dense<0.000000e+00> : vector<64xf32>
    %142 = vector.multi_reduction <add>, %141, %cst_57 [1] : vector<64x64xf32> to vector<64xf32>
    %143 = vector.shape_cast %142 : vector<64xf32> to vector<64x1xf32>
    %cst_58 = arith.constant 6.400000e+01 : f32
    %144 = vector.broadcast %cst_58 : f32 to vector<64x1xf32>
    %145 = arith.divf %143, %144 : vector<64x1xf32>
    %146 = vector.broadcast %138 : vector<64x1xf32> to vector<64x64xf32>
    %147 = arith.subf %132, %146 : vector<64x64xf32>
    %cst_59 = arith.constant 9.99999974E-6 : f32
    %148 = vector.broadcast %cst_59 : f32 to vector<64x1xf32>
    %149 = arith.addf %145, %148 : vector<64x1xf32>
    %150 = math.rsqrt %149 : vector<64x1xf32>
    %151 = vector.broadcast %150 : vector<64x1xf32> to vector<64x64xf32>
    %152 = arith.mulf %147, %151 : vector<64x64xf32>
    %153 = vector.broadcast %133 : vector<1x64xf32> to vector<64x64xf32>
    %154 = arith.mulf %152, %153 : vector<64x64xf32>
    %155 = vector.broadcast %134 : vector<1x64xf32> to vector<64x64xf32>
    %156 = arith.addf %154, %155 : vector<64x64xf32>
    %cst_60 = arith.constant 0.000000e+00 : f32
    %157 = vector.broadcast %cst_60 : f32 to vector<64x64xf32>
    %158 = arith.maximumf %156, %157 : vector<64x64xf32>
    %159 = arith.truncf %158 : vector<64x64xf32> to vector<64x64xbf16>
    %c160 = arith.constant 160 : index
    %c0_61 = arith.constant 0 : index
    %160 = vector.load %arg2[%c160, %c0_61] : memref<288x128xbf16, #tpu.memory_space<vmem>>, vector<64x32xbf16>
    %cst_62 = arith.constant dense<0.000000e+00> : vector<64x32xf32>
    %161 = tpu.matmul %159, %160, %cst_62 {dimension_numbers = #tpu.dot_dimension_numbers<[1], [0], [0], [1], [0, 0, 1, 1], [], []>} : vector<64x64xbf16>, vector<64x32xbf16>, vector<64x32xf32> -> vector<64x32xf32>
    %c12 = arith.constant 12 : index
    %c0_63 = arith.constant 0 : index
    %162 = vector.load %arg3[%c12, %c0_63] : memref<40x128xf32, #tpu.memory_space<vmem>>, vector<1x32xf32>
    %163 = vector.broadcast %162 : vector<1x32xf32> to vector<64x32xf32>
    %164 = arith.addf %161, %163 : vector<64x32xf32>
    %c13 = arith.constant 13 : index
    %c0_64 = arith.constant 0 : index
    %165 = vector.load %arg3[%c13, %c0_64] : memref<40x128xf32, #tpu.memory_space<vmem>>, vector<1x32xf32>
    %c14 = arith.constant 14 : index
    %c0_65 = arith.constant 0 : index
    %166 = vector.load %arg3[%c14, %c0_65] : memref<40x128xf32, #tpu.memory_space<vmem>>, vector<1x32xf32>
    %cst_66 = arith.constant dense<0.000000e+00> : vector<64xf32>
    %167 = vector.multi_reduction <add>, %164, %cst_66 [1] : vector<64x32xf32> to vector<64xf32>
    %168 = vector.shape_cast %167 : vector<64xf32> to vector<64x1xf32>
    %cst_67 = arith.constant 3.200000e+01 : f32
    %169 = vector.broadcast %cst_67 : f32 to vector<64x1xf32>
    %170 = arith.divf %168, %169 : vector<64x1xf32>
    %171 = vector.broadcast %170 : vector<64x1xf32> to vector<64x32xf32>
    %172 = arith.subf %164, %171 : vector<64x32xf32>
    %173 = arith.mulf %172, %172 : vector<64x32xf32>
    %cst_68 = arith.constant dense<0.000000e+00> : vector<64xf32>
    %174 = vector.multi_reduction <add>, %173, %cst_68 [1] : vector<64x32xf32> to vector<64xf32>
    %175 = vector.shape_cast %174 : vector<64xf32> to vector<64x1xf32>
    %cst_69 = arith.constant 3.200000e+01 : f32
    %176 = vector.broadcast %cst_69 : f32 to vector<64x1xf32>
    %177 = arith.divf %175, %176 : vector<64x1xf32>
    %178 = vector.broadcast %170 : vector<64x1xf32> to vector<64x32xf32>
    %179 = arith.subf %164, %178 : vector<64x32xf32>
    %cst_70 = arith.constant 9.99999974E-6 : f32
    %180 = vector.broadcast %cst_70 : f32 to vector<64x1xf32>
    %181 = arith.addf %177, %180 : vector<64x1xf32>
    %182 = math.rsqrt %181 : vector<64x1xf32>
    %183 = vector.broadcast %182 : vector<64x1xf32> to vector<64x32xf32>
    %184 = arith.mulf %179, %183 : vector<64x32xf32>
    %185 = vector.broadcast %165 : vector<1x32xf32> to vector<64x32xf32>
    %186 = arith.mulf %184, %185 : vector<64x32xf32>
    %187 = vector.broadcast %166 : vector<1x32xf32> to vector<64x32xf32>
    %188 = arith.addf %186, %187 : vector<64x32xf32>
    %cst_71 = arith.constant 0.000000e+00 : f32
    %189 = vector.broadcast %cst_71 : f32 to vector<64x32xf32>
    %190 = arith.maximumf %188, %189 : vector<64x32xf32>
    %c128_72 = arith.constant 128 : index
    %c0_73 = arith.constant 0 : index
    %191 = vector.load %arg1[%c128_72, %c0_73] : memref<144x128xbf16, #tpu.memory_space<vmem>>, vector<16x64xbf16>
    %192 = arith.truncf %190 : vector<64x32xf32> to vector<64x32xbf16>
    %cst_74 = arith.constant dense<0.000000e+00> : vector<16x32xf32>
    %193 = tpu.matmul %191, %192, %cst_74 {dimension_numbers = #tpu.dot_dimension_numbers<[1], [0], [0], [1], [0, 0, 1, 1], [], []>} : vector<16x64xbf16>, vector<64x32xbf16>, vector<16x32xf32> -> vector<16x32xf32>
    %194 = vector.broadcast %14 : vector<16x1xf32> to vector<16x32xf32>
    %195 = arith.mulf %193, %194 : vector<16x32xf32>
    %196 = arith.truncf %195 : vector<16x32xf32> to vector<16x32xbf16>
    %c256 = arith.constant 256 : index
    %c0_75 = arith.constant 0 : index
    %197 = vector.load %arg2[%c256, %c0_75] : memref<288x128xbf16, #tpu.memory_space<vmem>>, vector<32x32xbf16>
    %cst_76 = arith.constant dense<0.000000e+00> : vector<16x32xf32>
    %198 = tpu.matmul %196, %197, %cst_76 {dimension_numbers = #tpu.dot_dimension_numbers<[1], [0], [0], [1], [0, 0, 1, 1], [], []>} : vector<16x32xbf16>, vector<32x32xbf16>, vector<16x32xf32> -> vector<16x32xf32>
    %c15 = arith.constant 15 : index
    %c0_77 = arith.constant 0 : index
    %199 = vector.load %arg3[%c15, %c0_77] : memref<40x128xf32, #tpu.memory_space<vmem>>, vector<1x32xf32>
    %200 = vector.broadcast %199 : vector<1x32xf32> to vector<16x32xf32>
    %201 = arith.addf %198, %200 : vector<16x32xf32>
    %c16_78 = arith.constant 16 : index
    %c0_79 = arith.constant 0 : index
    %202 = vector.load %arg3[%c16_78, %c0_79] : memref<40x128xf32, #tpu.memory_space<vmem>>, vector<1x32xf32>
    %c17 = arith.constant 17 : index
    %c0_80 = arith.constant 0 : index
    %203 = vector.load %arg3[%c17, %c0_80] : memref<40x128xf32, #tpu.memory_space<vmem>>, vector<1x32xf32>
    %cst_81 = arith.constant dense<0.000000e+00> : vector<16xf32>
    %204 = vector.multi_reduction <add>, %201, %cst_81 [1] : vector<16x32xf32> to vector<16xf32>
    %205 = vector.shape_cast %204 : vector<16xf32> to vector<16x1xf32>
    %cst_82 = arith.constant 3.200000e+01 : f32
    %206 = vector.broadcast %cst_82 : f32 to vector<16x1xf32>
    %207 = arith.divf %205, %206 : vector<16x1xf32>
    %208 = vector.broadcast %207 : vector<16x1xf32> to vector<16x32xf32>
    %209 = arith.subf %201, %208 : vector<16x32xf32>
    %210 = arith.mulf %209, %209 : vector<16x32xf32>
    %cst_83 = arith.constant dense<0.000000e+00> : vector<16xf32>
    %211 = vector.multi_reduction <add>, %210, %cst_83 [1] : vector<16x32xf32> to vector<16xf32>
    %212 = vector.shape_cast %211 : vector<16xf32> to vector<16x1xf32>
    %cst_84 = arith.constant 3.200000e+01 : f32
    %213 = vector.broadcast %cst_84 : f32 to vector<16x1xf32>
    %214 = arith.divf %212, %213 : vector<16x1xf32>
    %215 = vector.broadcast %207 : vector<16x1xf32> to vector<16x32xf32>
    %216 = arith.subf %201, %215 : vector<16x32xf32>
    %cst_85 = arith.constant 9.99999974E-6 : f32
    %217 = vector.broadcast %cst_85 : f32 to vector<16x1xf32>
    %218 = arith.addf %214, %217 : vector<16x1xf32>
    %219 = math.rsqrt %218 : vector<16x1xf32>
    %220 = vector.broadcast %219 : vector<16x1xf32> to vector<16x32xf32>
    %221 = arith.mulf %216, %220 : vector<16x32xf32>
    %222 = vector.broadcast %202 : vector<1x32xf32> to vector<16x32xf32>
    %223 = arith.mulf %221, %222 : vector<16x32xf32>
    %224 = vector.broadcast %203 : vector<1x32xf32> to vector<16x32xf32>
    %225 = arith.addf %223, %224 : vector<16x32xf32>
    %cst_86 = arith.constant 0.000000e+00 : f32
    %226 = vector.broadcast %cst_86 : f32 to vector<16x32xf32>
    %227 = arith.maximumf %225, %226 : vector<16x32xf32>
    %228 = arith.addf %227, %121 : vector<16x32xf32>
    %c0_87 = arith.constant 0 : index
    %c0_88 = arith.constant 0 : index
    %229 = vector.load %arg4[%c0_87, %c0_88] : memref<16x32xf32, #tpu.memory_space<vmem>>, vector<16x32xf32>
    tpu.vector_store %arg4[%c0_87, %c0_88], %228 {strides = array<i32>} : memref<16x32xf32, #tpu.memory_space<vmem>>, vector<16x32xf32>,
    return
  }
}

</mosaic_0001>

<bundles_post_ra>
// kernel: dgcnn_forward.1
= control target key start
LH: loop header
LB: loop body
LE: loop exit
PB: predicated region body
PF: predicated region fallthrough
CT: control target
= control target key end

     0   :  { %v2269_v1 = vmov 0.0   ;;  %vm35_vm0 = vcmask 130048   ;;  %vm2270_vm1 = vmmov 0   ;;  %s2903_s0 = inlined_call_operand.vmem [shape: f32[80,128], index: 0, kind: input, shape index: {}]   ;;  %s2904_s1 = inlined_call_operand.vmem [shape: bf16[144,128], index: 1, kind: input, shape index: {}]   ;;  %s2905_s2 = inlined_call_operand.vmem [shape: bf16[288,128], index: 2, kind: input, shape index: {}]   ;;  %s2906_s3 = inlined_call_operand.vmem [shape: f32[40,128], index: 3, kind: input, shape index: {}]   ;;  %s2907_s4 = inlined_call_operand.hbm [shape: f32[16,32], index: 4, kind: output, shape index: {}]  }
   0x1   :  { %v2146_v0 = vld [vmem:[%s2905_s2] sm:$0xff]   ;;  %1997 = vmatprep.subr.bf16.mxu0 %v2269_v1  ;;  %v20_v3 = vld [vmem:[%s2903_s0 + $0x8] sm:$0xff]  ;;  %1999 = vmatprep.mubr.msk.bf16.mxu0 %vm2270_vm1, %v2269_v1 }
   0x2   :  { %v19_v2 = vld [vmem:[%s2903_s0] sm:$0xff]  ;;  %1998 = vmatpush3.bf16.msra.mxu0 %v2146_v0 }
   0x3   :  { %v21_v4 = vpack.c.bf16 %v20_v3, %v19_v2  ;;  %2013 = vmatprep.subr.bf16.mxu0 %v2269_v1 }
   0x5   :  { %2000 = vmatmul.mubr.msk.bf16.vlgmr.msra.gmra.mrb[0].mxu0 %vm35_vm0, %v21_v4 }
   0x6   :  { %2017 = vmatprep.mubr.msk.bf16.mxu0 %vm2270_vm1, %v2269_v1 }
   0x7   :  { %9 = vsyncpa [#allocation3], 0  ;;  %v2147_v5 = vld [vmem:[%s2905_s2 + $0x10] sm:$0xff]   ;;  %v2148_v6 = vld [vmem:[%s2905_s2 + $0x18] sm:$0xff]   ;;  %vm201_vm2 = vcmask 261120   ;;  %s2271_s8 = smov 64  }
   0x8   :  { %2014 = vmatpush3.bf16.msra.mxu0 %v2147_v5  ;;  %v1854_v7 = vld [vmem:[%s2906_s3] ss:$0 sm:$0xff]  ;;  %v2157_v16 = vld [vmem:[%s2905_s2 + $0x8] sm:$0xff]   ;;  %v80_v17 = vld [vmem:[%s2903_s0 + $0x10] sm:$0xff]  ;;  %vm474_vm3 = vcmask 523264   ;;  %s2273_s21 = smov [#allocation2]  }
   0x9   :  { %2015 = vmatprep.subr.bf16.mxu0 %v2269_v1  ;;  %v2337_v15 = vld [vmem:[%s2904_s1] sm:$0xff]   ;;  %v81_v18 = vld [vmem:[%s2903_s0 + $0x18] sm:$0xff]  ;;  %v83_v21 = vld [vmem:[%s2903_s0 + $0x28] sm:$0xff]  ;;  %2003 = vmatprep.subr.bf16.mxu1 %v2157_v16 }
   0xa   :  { %v88_v19 = vpack.c.bf16 %v81_v18, %v80_v17  ;;  %v82_v20 = vld [vmem:[%s2903_s0 + $0x20] sm:$0xff]  ;;  %v84_v22 = vld [vmem:[%s2903_s0 + $0x30] sm:$0xff]  ;;  %v85_v24 = vld [vmem:[%s2903_s0 + $0x38] sm:$0xff]  ;;  %2004 = vmatpush3.bf16.msra.mxu1 %v2157_v16 }
   0xb   :  { %v89_v23 = vpack.c.bf16 %v83_v21, %v82_v20  ;;  %v90_v25 = vpack.c.bf16 %v85_v24, %v84_v22  ;;  %v86_v26 = vld [vmem:[%s2903_s0 + $0x40] sm:$0xff]  ;;  %v87_v27 = vld [vmem:[%s2903_s0 + $0x48] sm:$0xff]  ;;  %v2380_v35 = vld [vmem:[%s2904_s1 + $0x10] sm:$0xff]  }
   0xc   :  { %2016 = vmatpush3.bf16.msra.mxu0 %v2148_v6  ;;  %2005 = vmatprep.mubr.msk.bf16.mxu1 %vm35_vm0, %v88_v19  ;;  %v91_v28 = vpack.c.bf16 %v87_v27, %v86_v26  ;;  %v2375_v34 = vld [vmem:[%s2904_s1 + $0x8] sm:$0xff]   ;;  %v2390_v36 = vld [vmem:[%s2904_s1 + $0x18] sm:$0xff]   ;;  %v2395_v37 = vld [vmem:[%s2904_s1 + $0x20] sm:$0xff]  }
   0xd   :  { %2006 = vmatmul.mubr.msk.bf16.vlgmr.msra.gmra.mrb[0].mxu1 %vm35_vm0, %v89_v23  ;;  %v2404_v38 = vld [vmem:[%s2904_s1 + $0x28] sm:$0xff]   ;;  %v2409_v39 = vld [vmem:[%s2904_s1 + $0x30] sm:$0xff]   ;;  %v2418_v40 = vld [vmem:[%s2904_s1 + $0x38] sm:$0xff]  }
   0xe   :  { %2009 = vmatprep.mubr.msk.bf16.mxu1 %vm35_vm0, %v90_v25  ;;  %v1857_v2 = vld [vmem:[%s2906_s3 + $0x1] ss:$0 sm:$0xff] }
  0x15   :  { %2010 = vmatmul.mubr.msk.bf16.gmra.mrb[4].mxu1 %vm35_vm0, %v91_v28 }
  0xd8   :  { %v73_v8 = vpop.f32.mrb[0].mxu0 }
  0xd9   :  { %v2001_v9 = vpop.f32.mrb[1].mxu0  ;;  %v2327_v11 = vadd.f32 %v1854_v7, %v73_v8 }
  0xda   :  { %v76_v10 = vpop.f32.mrb[2].mxu0 }
  0xdb   :  { %v2329_v12 = vadd.f32 %v1854_v7, %v76_v10  ;;  %v2002_v13 = vpop.f32.mrb[3].mxu0 }
  0xdd   :  { %v184_v14 = vpack.c.bf16 %v2329_v12, %v2327_v11 }
  0xdf   :  { %2018 = vmatmul.mubr.msk.bf16.vlgmr.msra.gmra.mrb[4].mxu0 %vm201_vm2, %v184_v14 }
  0xe0   :  { %2023 = vmatprep.mubr.msk.bf16.mxu0 %vm35_vm0, %v2337_v15  ;;  %v2007_v41 = vpop.f32.mrb[0].mxu1 }
  0xe1   :  { %v151_v42 = vpop.f32.mrb[1].mxu1  ;;  %v2439_v6 = vadd.f32 %v2007_v41, %v1857_v2 }
  0xe2   :  { %v2008_v43 = vpop.f32.mrb[2].mxu1  ;;  %v2437_v3 = vadd.f32 %v1857_v2, %v151_v42 }
  0xe3   :  { %v154_v44 = vpop.f32.mrb[3].mxu1  ;;  %v2446_v20 = vadd.f32 %v2008_v43, %v1857_v2 }
  0xe4   :  { %v2442_v13 = vadd.f32 %v1857_v2, %v154_v44 }
  0xe8   :  { %v2011_v51 = vpop.f32.mrb[4].mxu1 }
  0xe9   :  { %v167_v53 = vpop.f32.mrb[5].mxu1 }
  0xea   :  { %v2012_v55 = vpop.f32.mrb[6].mxu1  ;;  %v2448_v21 = vadd.f32 %v1857_v2, %v167_v53 }
  0xeb   :  { %v170_v56 = vpop.f32.mrb[7].mxu1 }
  0xec   :  { %v2451_v24 = vadd.f32 %v1857_v2, %v170_v56 }
 0x1b2   :  { %v239_v29 = vpop.f32.mrb[4].mxu0 }
 0x1b3   :  { %v2019_v30 = vpop.f32.mrb[5].mxu0 }
 0x1b4   :  { %v242_v31 = vpop.f32.mrb[6].mxu0 }
 0x1b5   :  { %v262_v32 = vpack.c.bf16 %v242_v31, %v239_v29  ;;  %v2020_v33 = vpop.f32.mrb[7].mxu0 }
 0x1b7   :  { %2021 = vmatprep.subr.bf16.mxu0 %v262_v32 }
 0x1b8   :  { %2022 = vmatpush3.bf16.msra.mxu0 %v262_v32  ;;  %v2457_v32 = vadd.f32 %v2011_v51, %v1857_v2 }
 0x1b9   :  { %2075 = vmatprep.subr.bf16.mxu0 %v2269_v1 }
 0x1bb   :  { %2024 = vmatmul.mubr.msk.bf16.vlgmr.msra.gmra.mrb[8].mxu0 %vm35_vm0, %v2375_v34 }
 0x1bc   :  { %2027 = vmatprep.mubr.msk.bf16.mxu0 %vm35_vm0, %v2380_v35 }
 0x1c3   :  { %2028 = vmatmul.mubr.msk.bf16.gmra.mrb[12].mxu0 %vm35_vm0, %v2390_v36 }
 0x1c4   :  { %2031 = vmatprep.mubr.msk.bf16.mxu0 %vm35_vm0, %v2395_v37 }
 0x1cb   :  { %2032 = vmatmul.mubr.msk.bf16.gmra.mrb[16].mxu0 %vm35_vm0, %v2404_v38 }
 0x1cc   :  { %2035 = vmatprep.mubr.msk.bf16.mxu0 %vm35_vm0, %v2409_v39 }
 0x1d3   :  { %2036 = vmatmul.mubr.msk.bf16.gmra.mrb[20].mxu0 %vm35_vm0, %v2418_v40 }
 0x1d4   :  { %2079 = vmatprep.mubr.msk.bf16.mxu0 %vm2270_vm1, %v2269_v1 }
 0x28e   :  { %v2025_v45 = vpop.f32.mrb[8].mxu0 }
 0x28f   :  { %v361_v46 = vpop.f32.mrb[9].mxu0 }
 0x290   :  { %v2026_v47 = vpop.f32.mrb[10].mxu0 }
 0x291   :  { %v364_v48 = vpop.f32.mrb[11].mxu0 }
 0x296   :  { %v2029_v49 = vpop.f32.mrb[12].mxu0 }
 0x297   :  { %v377_v50 = vpop.f32.mrb[13].mxu0 }
 0x298   :  { %v2424_v52 = vpop.f32.mrb[14].mxu0 }
 0x299   :  { %v380_v54 = vpop.f32.mrb[15].mxu0 }
 0x29e   :  { %v2033_v57 = vpop.f32.mrb[16].mxu0 }
 0x29f   :  { %436 = vrot.lane.b32.xlu1 %v2033_v57, %s2271_s8  ;;  %v393_v58 = vpop.f32.mrb[17].mxu0 }
 0x2a0   :  { %432 = vrot.lane.b32.xlu0 %v393_v58, %s2271_s8  ;;  %v2034_v59 = vpop.f32.mrb[18].mxu0 }
 0x2a1   :  { %v396_v60 = vpop.f32.mrb[19].mxu0 }
 0x2a3   :  { %438 = vrot.lane.b32.xlu1 %v2034_v59, %s2271_s8 }
 0x2a4   :  { %434 = vrot.lane.b32.xlu0 %v396_v60, %s2271_s8 }
 0x2a6   :  { %v2037_v61 = vpop.f32.mrb[20].mxu0 }
 0x2a7   :  { %v409_v62 = vpop.f32.mrb[21].mxu0 }
 0x2a8   :  { %440 = vrot.lane.b32.xlu0 %v409_v62, %s2271_s8  ;;  %v2038_v63 = vpop.f32.mrb[22].mxu0 }
 0x2a9   :  { %v412_v0 = vpop.f32.mrb[23].mxu0 }
 0x2aa   :  { %442 = vrot.lane.b32.xlu1 %v412_v0, %s2271_s8 }
 0x2ac   :  { %444 = vrot.lane.b32.xlu0 %v2037_v61, %s2271_s8 }
 0x2ae   :  { %446 = vrot.lane.b32.xlu1 %v2038_v63, %s2271_s8 }
 0x311   :  { %v437_v4 = vpop.permute.xlu1 %436 }
 0x312   :  { %v433_v5 = vpop.permute.xlu0 %432  ;;  %v458_v7 = vadd.f32 %v2025_v45, %v437_v4 }
 0x313   :  { %v456_v8 = vadd.f32 %v433_v5, %v361_v46  ;;  %v2462_v46 = vadd.f32 %v2012_v55, %v1857_v2 }
 0x314   :  { %v466_v19 = vadd.f32 %v458_v7, %v2439_v6 }
 0x315   :  { %v439_v9 = vpop.permute.xlu1 %438  ;;  %v464_v10 = vadd.f32 %v456_v8, %v2437_v3 }
 0x316   :  { %v435_v14 = vpop.permute.xlu0 %434  ;;  %v459_v16 = vadd.f32 %v2026_v47, %v439_v9  ;;  %v481_v26 = vsel %vm474_vm3, %v466_v19, 0.0 }
 0x317   :  { %v457_v17 = vadd.f32 %v435_v14, %v364_v48  ;;  %v475_v18 = vsel %vm474_vm3, %v464_v10, 0.0 }
 0x318   :  { %476 = vadd.xlane.f32.xlu0 %v475_v18  ;;  %v467_v28 = vadd.f32 %v459_v16, %v2446_v20 }
 0x319   :  { %v465_v22 = vadd.f32 %v457_v17, %v2442_v13 }
 0x31a   :  { %v441_v23 = vpop.permute.xlu0 %440  ;;  %v484_v42 = vsel %vm474_vm3, %v467_v28, 0.0 }
 0x31b   :  { %v460_v25 = vadd.f32 %v441_v23, %v377_v50  ;;  %v478_v27 = vsel %vm474_vm3, %v465_v22, 0.0 }
 0x31c   :  { %482 = vadd.xlane.f32.xlu0 %v481_v26  ;;  %479 = vadd.xlane.f32.xlu1 %v478_v27  ;;  %v443_v29 = vpop.permute.xlu1 %442 }
 0x31d   :  { %v461_v30 = vadd.f32 %v443_v29, %v380_v54  ;;  %v468_v31 = vadd.f32 %v460_v25, %v2448_v21 }
 0x31e   :  { %v445_v33 = vpop.permute.xlu0 %444 }
 0x31f   :  { %v462_v41 = vadd.f32 %v2029_v49, %v445_v33  ;;  %v487_v43 = vsel %vm474_vm3, %v468_v31, 0.0  ;;  %v469_v44 = vadd.f32 %v461_v30, %v2451_v24 }
 0x320   :  { %485 = vadd.xlane.f32.xlu0 %v484_v42  ;;  %488 = vadd.xlane.f32.xlu1 %v487_v43  ;;  %v447_v45 = vpop.permute.xlu1 %446 }
 0x321   :  { %v463_v47 = vadd.f32 %v2424_v52, %v447_v45  ;;  %v470_v48 = vadd.f32 %v462_v41, %v2457_v32  ;;  %v490_v51 = vsel %vm474_vm3, %v469_v44, 0.0 }
 0x323   :  { %v493_v50 = vsel %vm474_vm3, %v470_v48, 0.0  ;;  %v471_v49 = vadd.f32 %v463_v47, %v2462_v46 }
 0x324   :  { %494 = vadd.xlane.f32.xlu1 %v493_v50  ;;  %491 = vadd.xlane.f32.xlu0 %v490_v51  ;;  %v2159_v50 = vld [vmem:[%s2905_s2 + $0x38] sm:$0xff]   ;;  %v2160_v51 = vld [vmem:[%s2905_s2 + $0x40] sm:$0xff]  }
 0x325   :  { %v496_v53 = vsel %vm474_vm3, %v471_v49, 0.0 }
 0x328   :  { %497 = vadd.xlane.f32.xlu0 %v496_v53 }
 0x3a5   :  { %v477_v54 = vpop.xlane.xlu0 %476 }
 0x3a6   :  { %v500_v56 = vmul.f32 0.015625, %v477_v54 }
 0x3a8   :  { %v2470_v57 = vsub.f32 %v464_v10, %v500_v56 }
 0x3a9   :  { %v483_v55 = vpop.xlane.xlu0 %482  ;;  %v480_v58 = vpop.xlane.xlu1 %479 }
 0x3aa   :  { %v502_v52 = vmul.f32 0.015625, %v483_v55  ;;  %v501_v59 = vmul.f32 0.015625, %v480_v58  ;;  %v516_v60 = vmul.f32 %v2470_v57, %v2470_v57 }
 0x3ac   :  { %v2474_v61 = vsub.f32 %v466_v19, %v502_v52  ;;  %v2476_v62 = vsub.f32 %v465_v22, %v501_v59  ;;  %v524_v63 = vsel %vm474_vm3, %v516_v60, 0.0 }
 0x3ad   :  { %v486_v0 = vpop.xlane.xlu0 %485  ;;  %525 = vadd.xlane.f32.xlu1 %v524_v63  ;;  %v489_v2 = vpop.xlane.xlu1 %488 }
 0x3ae   :  { %v503_v4 = vmul.f32 0.015625, %v486_v0  ;;  %v504_v5 = vmul.f32 0.015625, %v489_v2  ;;  %v518_v7 = vmul.f32 %v2474_v61, %v2474_v61  ;;  %v517_v8 = vmul.f32 %v2476_v62, %v2476_v62 }
 0x3b0   :  { %v2483_v9 = vsub.f32 %v467_v28, %v503_v4  ;;  %v2485_v10 = vsub.f32 %v468_v31, %v504_v5  ;;  %v530_v14 = vsel %vm474_vm3, %v518_v7, 0.0  ;;  %v527_v16 = vsel %vm474_vm3, %v517_v8, 0.0 }
 0x3b1   :  { %531 = vadd.xlane.f32.xlu1 %v530_v14  ;;  %v492_v17 = vpop.xlane.xlu0 %491  ;;  %528 = vadd.xlane.f32.xlu0 %v527_v16  ;;  %v495_v18 = vpop.xlane.xlu1 %494 }
 0x3b2   :  { %v505_v19 = vmul.f32 0.015625, %v492_v17  ;;  %v506_v22 = vmul.f32 0.015625, %v495_v18  ;;  %v519_v23 = vmul.f32 %v2483_v9, %v2483_v9  ;;  %v520_v25 = vmul.f32 %v2485_v10, %v2485_v10 }
 0x3b4   :  { %v2493_v26 = vsub.f32 %v469_v44, %v505_v19  ;;  %v2495_v27 = vsub.f32 %v470_v48, %v506_v22  ;;  %v533_v28 = vsel %vm474_vm3, %v519_v23, 0.0  ;;  %v536_v29 = vsel %vm474_vm3, %v520_v25, 0.0  ;;  %v2158_v48 = vld [vmem:[%s2905_s2 + $0x30] sm:$0xff]   ;;  %v1882_v22 = vld [vmem:[%s2906_s3 + $0x2] ss:$0 sm:$0xff] }
 0x3b5   :  { %v498_v30 = vpop.xlane.xlu0 %497  ;;  %534 = vadd.xlane.f32.xlu0 %v533_v28  ;;  %537 = vadd.xlane.f32.xlu1 %v536_v29 }
 0x3b6   :  { %v507_v31 = vmul.f32 0.015625, %v498_v30  ;;  %v521_v33 = vmul.f32 %v2493_v26, %v2493_v26  ;;  %v522_v41 = vmul.f32 %v2495_v27, %v2495_v27  ;;  %2039 = vmatprep.subr.bf16.mxu1 %v2158_v48 }
 0x3b7   :  { %2040 = vmatpush3.bf16.msra.mxu1 %v2158_v48 }
 0x3b8   :  { %v2503_v42 = vsub.f32 %v471_v49, %v507_v31  ;;  %v539_v43 = vsel %vm474_vm3, %v521_v33, 0.0  ;;  %v542_v44 = vsel %vm474_vm3, %v522_v41, 0.0  ;;  %2041 = vmatprep.subr.bf16.mxu1 %v2159_v50  ;;  %v2161_v49 = vld [vmem:[%s2905_s2 + $0x48] sm:$0xff]   ;;  %v1883_v41 = vld [vmem:[%s2906_s3 + $0x3] ss:$0 sm:$0xff] }
 0x3b9   :  { %540 = vadd.xlane.f32.xlu0 %v539_v43  ;;  %543 = vadd.xlane.f32.xlu1 %v542_v44 }
 0x3ba   :  { %v523_v45 = vmul.f32 %v2503_v42, %v2503_v42 }
 0x3bb   :  { %2042 = vmatpush3.bf16.msra.mxu1 %v2159_v50 }
 0x3bc   :  { %v545_v47 = vsel %vm474_vm3, %v523_v45, 0.0  ;;  %2043 = vmatprep.subr.bf16.mxu1 %v2160_v51 }
 0x3bd   :  { %546 = vadd.xlane.f32.xlu0 %v545_v47 }
 0x3bf   :  { %2044 = vmatpush3.bf16.msra.mxu1 %v2160_v51 }
 0x3c0   :  { %2045 = vmatprep.subr.bf16.mxu1 %v2161_v49 }
 0x3c3   :  { %2046 = vmatpush3.bf16.msra.mxu1 %v2161_v49 }
 0x3c4   :  { %2055 = vmatprep.subr.bf16.mxu1 %v2269_v1 }
 0x43a   :  { %v526_v53 = vpop.xlane.xlu1 %525 }
 0x43b   :  { %v548_v54 = vmul.f32 0.015625, %v526_v53 }
 0x43d   :  { %v556_v56 = vadd.f32 1e-05, %v548_v54 }
 0x43e   :  { %v529_v55 = vpop.xlane.xlu0 %528  ;;  %v532_v58 = vpop.xlane.xlu1 %531 }
 0x43f   :  { %2173 = vrsqrt.f32 %v556_v56  ;;  %v549_v52 = vmul.f32 0.015625, %v529_v55  ;;  %v550_v59 = vmul.f32 0.015625, %v532_v58 }
 0x441   :  { %v557_v60 = vadd.f32 1e-05, %v549_v52  ;;  %v558_v63 = vadd.f32 1e-05, %v550_v59 }
 0x442   :  { %v535_v0 = vpop.xlane.xlu0 %534  ;;  %v538_v2 = vpop.xlane.xlu1 %537 }
 0x443   :  { %2175 = vrsqrt.f32 %v557_v60  ;;  %v551_v4 = vmul.f32 0.015625, %v535_v0  ;;  %v552_v5 = vmul.f32 0.015625, %v538_v2 }
 0x444   :  { %2177 = vrsqrt.f32 %v558_v63 }
 0x445   :  { %v559_v7 = vadd.f32 1e-05, %v551_v4  ;;  %v560_v8 = vadd.f32 1e-05, %v552_v5 }
 0x446   :  { %v541_v14 = vpop.xlane.xlu0 %540  ;;  %v544_v16 = vpop.xlane.xlu1 %543 }
 0x447   :  { %2179 = vrsqrt.f32 %v559_v7  ;;  %v553_v17 = vmul.f32 0.015625, %v541_v14  ;;  %v554_v18 = vmul.f32 0.015625, %v544_v16 }
 0x448   :  { %2181 = vrsqrt.f32 %v560_v8 }
 0x449   :  { %v2174_v19 = vpop.eup %2173  ;;  %v561_v23 = vadd.f32 1e-05, %v553_v17  ;;  %v562_v25 = vadd.f32 1e-05, %v554_v18 }
 0x44a   :  { %v572_v28 = vmul.f32 %v2174_v19, %v2470_v57  ;;  %v547_v29 = vpop.xlane.xlu0 %546 }
 0x44b   :  { %2183 = vrsqrt.f32 %v561_v23  ;;  %v555_v30 = vmul.f32 0.015625, %v547_v29 }
 0x44c   :  { %2185 = vrsqrt.f32 %v562_v25  ;;  %v584_v31 = vmul.f32 %v1882_v22, %v572_v28 }
 0x44d   :  { %v2176_v33 = vpop.eup %2175  ;;  %v563_v43 = vadd.f32 1e-05, %v555_v30 }
 0x44e   :  { %v2178_v44 = vpop.eup %2177  ;;  %v573_v45 = vmul.f32 %v2176_v33, %v2476_v62  ;;  %v596_v50 = vadd.f32 %v1883_v41, %v584_v31 }
 0x44f   :  { %v574_v47 = vmul.f32 %v2178_v44, %v2474_v61  ;;  %2187 = vrsqrt.f32 %v563_v43 }
 0x450   :  { %v585_v48 = vmul.f32 %v1882_v22, %v573_v45  ;;  %v604_v52 = vmax.f32 %v596_v50, 0.0 }
 0x451   :  { %v2180_v57 = vpop.eup %2179  ;;  %v586_v51 = vmul.f32 %v1882_v22, %v574_v47 }
 0x452   :  { %v2182_v49 = vpop.eup %2181  ;;  %v575_v53 = vmul.f32 %v2180_v57, %v2483_v9  ;;  %v597_v54 = vadd.f32 %v1883_v41, %v585_v48 }
 0x453   :  { %v576_v56 = vmul.f32 %v2182_v49, %v2485_v10  ;;  %v598_v55 = vadd.f32 %v1883_v41, %v586_v51 }
 0x454   :  { %v587_v58 = vmul.f32 %v1882_v22, %v575_v53  ;;  %v605_v59 = vmax.f32 %v597_v54, 0.0 }
 0x455   :  { %v2184_v60 = vpop.eup %2183  ;;  %v588_v63 = vmul.f32 %v1882_v22, %v576_v56  ;;  %v606_v5 = vmax.f32 %v598_v55, 0.0 }
 0x456   :  { %v2186_v62 = vpop.eup %2185  ;;  %v599_v0 = vadd.f32 %v1883_v41, %v587_v58  ;;  %v577_v61 = vmul.f32 %v2184_v60, %v2493_v26  ;;  %v612_v2 = vpack.c.bf16 %v605_v59, %v604_v52 }
 0x457   :  { %v578_v4 = vmul.f32 %v2186_v62, %v2495_v27  ;;  %v600_v8 = vadd.f32 %v1883_v41, %v588_v63 }
 0x458   :  { %v607_v7 = vmax.f32 %v599_v0, 0.0  ;;  %2047 = vmatprep.mubr.msk.bf16.mxu1 %vm474_vm3, %v612_v2  ;;  %v589_v9 = vmul.f32 %v1882_v22, %v577_v61 }
 0x459   :  { %v2188_v10 = vpop.eup %2187  ;;  %v590_v14 = vmul.f32 %v1882_v22, %v578_v4  ;;  %v608_v19 = vmax.f32 %v600_v8, 0.0 }
 0x45a   :  { %v579_v16 = vmul.f32 %v2188_v10, %v2503_v42  ;;  %v613_v17 = vpack.c.bf16 %v607_v7, %v606_v5  ;;  %v601_v18 = vadd.f32 %v1883_v41, %v589_v9  ;;  %v1884_v42 = vld [vmem:[%s2906_s3 + $0x4] ss:$0 sm:$0xff] }
 0x45b   :  { %v602_v25 = vadd.f32 %v1883_v41, %v590_v14 }
 0x45c   :  { %2048 = vmatmul.mubr.msk.bf16.vlgmr.msra.gmra.mrb[8].mxu1 %vm474_vm3, %v613_v17  ;;  %v609_v23 = vmax.f32 %v601_v18, 0.0  ;;  %v591_v26 = vmul.f32 %v1882_v22, %v579_v16 }
 0x45d   :  { %v610_v29 = vmax.f32 %v602_v25, 0.0 }
 0x45e   :  { %v614_v28 = vpack.c.bf16 %v609_v23, %v608_v19  ;;  %v603_v27 = vadd.f32 %v1883_v41, %v591_v26 }
 0x460   :  { %2051 = vmatprep.mubr.msk.bf16.mxu1 %vm474_vm3, %v614_v28  ;;  %v611_v30 = vmax.f32 %v603_v27, 0.0 }
 0x462   :  { %v615_v31 = vpack.c.bf16 %v611_v30, %v610_v29 }
 0x464   :  { %2052 = vmatmul.mubr.msk.bf16.gmra.mrb[12].mxu1 %vm474_vm3, %v615_v31 }
 0x465   :  { %2063 = vmatprep.mubr.msk.bf16.mxu1 %vm2270_vm1, %v2269_v1 }
 0x52f   :  { %v2049_v33 = vpop.f32.mrb[8].mxu1 }
 0x530   :  { %v699_v43 = vpop.f32.mrb[9].mxu1  ;;  %v708_v41 = vadd.f32 %v2049_v33, %v1884_v42 }
 0x531   :  { %v700_v22 = vadd.f32 %v1884_v42, %v699_v43  ;;  %v2050_v44 = vpop.f32.mrb[10].mxu1 }
 0x532   :  { %v702_v45 = vpop.f32.mrb[11].mxu1  ;;  %v711_v50 = vadd.f32 %v2050_v44, %v1884_v42  ;;  %v738_v49 = vsel %vm201_vm2, %v708_v41, 0.0 }
 0x533   :  { %v703_v47 = vadd.f32 %v1884_v42, %v702_v45  ;;  %v732_v48 = vsel %vm201_vm2, %v700_v22, 0.0 }
 0x534   :  { %733 = vadd.xlane.f32.xlu1 %v732_v48  ;;  %v741_v55 = vsel %vm201_vm2, %v711_v50, 0.0 }
 0x535   :  { %v735_v57 = vsel %vm201_vm2, %v703_v47, 0.0 }
 0x536   :  { %736 = vadd.xlane.f32.xlu0 %v735_v57 }
 0x537   :  { %v2053_v51 = vpop.f32.mrb[12].mxu1 }
 0x538   :  { %739 = vadd.xlane.f32.xlu1 %v738_v49  ;;  %v715_v53 = vpop.f32.mrb[13].mxu1  ;;  %v724_v52 = vadd.f32 %v2053_v51, %v1884_v42 }
 0x539   :  { %v716_v54 = vadd.f32 %v1884_v42, %v715_v53  ;;  %v2054_v56 = vpop.f32.mrb[14].mxu1 }
 0x53a   :  { %742 = vadd.xlane.f32.xlu0 %v741_v55  ;;  %v718_v58 = vpop.f32.mrb[15].mxu1  ;;  %v727_v63 = vadd.f32 %v2054_v56, %v1884_v42  ;;  %v750_v0 = vsel %vm201_vm2, %v724_v52, 0.0 }
 0x53b   :  { %v719_v59 = vadd.f32 %v1884_v42, %v718_v58  ;;  %v744_v60 = vsel %vm201_vm2, %v716_v54, 0.0 }
 0x53c   :  { %745 = vadd.xlane.f32.xlu1 %v744_v60  ;;  %v753_v61 = vsel %vm201_vm2, %v727_v63, 0.0  ;;  %v182_v60 = vld [vmem:[%s2906_s3 + $0x18] sm:$0xff] }
 0x53d   :  { %v747_v62 = vsel %vm201_vm2, %v719_v59, 0.0 }
 0x53e   :  { %748 = vadd.xlane.f32.xlu0 %v747_v62  ;;  %v2272_v62 = vmov 0  }
 0x53f   :  { %2144 = vset.pattern.permute.xlu1 %v2272_v62  ;;  %2145 = vset.pattern.permute.xlu0 %v2272_v62 }
 0x540   :  { %751 = vadd.xlane.f32.xlu1 %v750_v0 }
 0x542   :  { %754 = vadd.xlane.f32.xlu0 %v753_v61 }
 0x5c1   :  { %v734_v2 = vpop.xlane.xlu1 %733 }
 0x5c2   :  { %v757_v4 = vmul.f32 0.03125, %v734_v2 }
 0x5c3   :  { %v737_v5 = vpop.xlane.xlu0 %736 }
 0x5c4   :  { %v2554_v7 = vsub.f32 %v700_v22, %v757_v4  ;;  %v758_v9 = vmul.f32 0.03125, %v737_v5 }
 0x5c5   :  { %v740_v8 = vpop.xlane.xlu1 %739 }
 0x5c6   :  { %v2556_v10 = vsub.f32 %v703_v47, %v758_v9  ;;  %v759_v14 = vmul.f32 0.03125, %v740_v8  ;;  %v773_v16 = vmul.f32 %v2554_v7, %v2554_v7 }
 0x5c7   :  { %v743_v17 = vpop.xlane.xlu0 %742 }
 0x5c8   :  { %v2560_v18 = vsub.f32 %v708_v41, %v759_v14  ;;  %v760_v19 = vmul.f32 0.03125, %v743_v17  ;;  %v781_v23 = vsel %vm201_vm2, %v773_v16, 0.0  ;;  %v774_v26 = vmul.f32 %v2556_v10, %v2556_v10 }
 0x5c9   :  { %782 = vadd.xlane.f32.xlu1 %v781_v23  ;;  %v746_v25 = vpop.xlane.xlu1 %745 }
 0x5ca   :  { %v2565_v28 = vsub.f32 %v711_v50, %v760_v19  ;;  %v761_v27 = vmul.f32 0.03125, %v746_v25  ;;  %v784_v29 = vsel %vm201_vm2, %v774_v26, 0.0  ;;  %v775_v30 = vmul.f32 %v2560_v18, %v2560_v18 }
 0x5cb   :  { %785 = vadd.xlane.f32.xlu0 %v784_v29  ;;  %v749_v31 = vpop.xlane.xlu0 %748 }
 0x5cc   :  { %v2570_v42 = vsub.f32 %v716_v54, %v761_v27  ;;  %v762_v33 = vmul.f32 0.03125, %v749_v31  ;;  %v787_v43 = vsel %vm201_vm2, %v775_v30, 0.0  ;;  %v776_v22 = vmul.f32 %v2565_v28, %v2565_v28 }
 0x5cd   :  { %788 = vadd.xlane.f32.xlu1 %v787_v43  ;;  %v752_v44 = vpop.xlane.xlu1 %751 }
 0x5ce   :  { %v2575_v45 = vsub.f32 %v719_v59, %v762_v33  ;;  %v763_v41 = vmul.f32 0.03125, %v752_v44  ;;  %v790_v47 = vsel %vm201_vm2, %v776_v22, 0.0  ;;  %v777_v48 = vmul.f32 %v2570_v42, %v2570_v42 }
 0x5cf   :  { %791 = vadd.xlane.f32.xlu0 %v790_v47  ;;  %v755_v50 = vpop.xlane.xlu0 %754 }
 0x5d0   :  { %v2580_v57 = vsub.f32 %v724_v52, %v763_v41  ;;  %v764_v51 = vmul.f32 0.03125, %v755_v50  ;;  %v793_v49 = vsel %vm201_vm2, %v777_v48, 0.0  ;;  %v778_v53 = vmul.f32 %v2575_v45, %v2575_v45  ;;  %v1893_v48 = vld [vmem:[%s2906_s3 + $0x5] ss:$0 sm:$0xff] }
 0x5d1   :  { %794 = vadd.xlane.f32.xlu1 %v793_v49 }
 0x5d2   :  { %v2585_v54 = vsub.f32 %v727_v63, %v764_v51  ;;  %v796_v56 = vsel %vm201_vm2, %v778_v53, 0.0  ;;  %v779_v55 = vmul.f32 %v2580_v57, %v2580_v57  ;;  %v183_v63 = vld [vmem:[%s2906_s3 + $0x20] sm:$0xff] }
 0x5d3   :  { %797 = vadd.xlane.f32.xlu0 %v796_v56  ;;  %v1894_v53 = vld [vmem:[%s2906_s3 + $0x6] ss:$0 sm:$0xff] }
 0x5d4   :  { %v799_v58 = vsel %vm201_vm2, %v779_v55, 0.0  ;;  %v780_v52 = vmul.f32 %v2585_v54, %v2585_v54 }
 0x5d5   :  { %800 = vadd.xlane.f32.xlu1 %v799_v58 }
 0x5d6   :  { %v802_v59 = vsel %vm201_vm2, %v780_v52, 0.0 }
 0x5d7   :  { %803 = vadd.xlane.f32.xlu0 %v802_v59 }
 0x5e6   :  { %926 = vperm.xlu1 %2144, %v182_v60  }
 0x5ed   :  { %931 = vperm.xlu0 %2145, %v183_v63  }
 0x656   :  { %v783_v0 = vpop.xlane.xlu1 %782 }
 0x657   :  { %v805_v61 = vmul.f32 0.03125, %v783_v0 }
 0x658   :  { %v786_v2 = vpop.xlane.xlu0 %785 }
 0x659   :  { %v813_v4 = vadd.f32 1e-05, %v805_v61  ;;  %v806_v5 = vmul.f32 0.03125, %v786_v2 }
 0x65a   :  { %v789_v9 = vpop.xlane.xlu1 %788 }
 0x65b   :  { %2189 = vrsqrt.f32 %v813_v4  ;;  %v814_v8 = vadd.f32 1e-05, %v806_v5  ;;  %v807_v14 = vmul.f32 0.03125, %v789_v9 }
 0x65c   :  { %v792_v16 = vpop.xlane.xlu0 %791 }
 0x65d   :  { %2191 = vrsqrt.f32 %v814_v8  ;;  %v815_v17 = vadd.f32 1e-05, %v807_v14  ;;  %v808_v19 = vmul.f32 0.03125, %v792_v16 }
 0x65e   :  { %v795_v23 = vpop.xlane.xlu1 %794 }
 0x65f   :  { %2193 = vrsqrt.f32 %v815_v17  ;;  %v816_v26 = vadd.f32 1e-05, %v808_v19  ;;  %v809_v25 = vmul.f32 0.03125, %v795_v23 }
 0x660   :  { %v798_v27 = vpop.xlane.xlu0 %797 }
 0x661   :  { %2195 = vrsqrt.f32 %v816_v26  ;;  %v817_v29 = vadd.f32 1e-05, %v809_v25  ;;  %v810_v30 = vmul.f32 0.03125, %v798_v27 }
 0x662   :  { %v801_v31 = vpop.xlane.xlu1 %800 }
 0x663   :  { %2197 = vrsqrt.f32 %v817_v29  ;;  %v818_v33 = vadd.f32 1e-05, %v810_v30  ;;  %v811_v43 = vmul.f32 0.03125, %v801_v31 }
 0x664   :  { %v804_v22 = vpop.xlane.xlu0 %803 }
 0x665   :  { %v2190_v44 = vpop.eup %2189  ;;  %2199 = vrsqrt.f32 %v818_v33  ;;  %v819_v41 = vadd.f32 1e-05, %v811_v43  ;;  %v812_v47 = vmul.f32 0.03125, %v804_v22 }
 0x666   :  { %v829_v50 = vmul.f32 %v2190_v44, %v2554_v7 }
 0x667   :  { %v2192_v51 = vpop.eup %2191  ;;  %2201 = vrsqrt.f32 %v819_v41  ;;  %v820_v49 = vadd.f32 1e-05, %v812_v47 }
 0x668   :  { %v830_v56 = vmul.f32 %v2192_v51, %v2556_v10  ;;  %v841_v55 = vmul.f32 %v1893_v48, %v829_v50 }
 0x669   :  { %v2194_v58 = vpop.eup %2193  ;;  %2203 = vrsqrt.f32 %v820_v49  ;;  %v2164_v49 = vld [vmem:[%s2905_s2 + $0x78] sm:$0xff]  }
 0x66a   :  { %v831_v52 = vmul.f32 %v2194_v58, %v2560_v18  ;;  %v842_v59 = vmul.f32 %v1893_v48, %v830_v56  ;;  %v853_v60 = vadd.f32 %v1894_v53, %v841_v55 }
 0x66b   :  { %v2196_v63 = vpop.eup %2195 }
 0x66c   :  { %v832_v62 = vmul.f32 %v2196_v63, %v2565_v28  ;;  %v854_v7 = vadd.f32 %v1894_v53, %v842_v59  ;;  %v843_v0 = vmul.f32 %v1893_v48, %v831_v52  ;;  %v861_v2 = vmax.f32 %v853_v60, 0.0  ;;  %v2636_v55 = vpop.permute.xlu0 %931 }
 0x66d   :  { %v2198_v61 = vpop.eup %2197 }
 0x66e   :  { %v833_v4 = vmul.f32 %v2198_v61, %v2570_v42  ;;  %v862_v5 = vmax.f32 %v854_v7, 0.0  ;;  %v844_v9 = vmul.f32 %v1893_v48, %v832_v62  ;;  %v855_v8 = vadd.f32 %v1894_v53, %v843_v0  ;;  %v1897_v7 = vld [vmem:[%s2906_s3 + $0x7] ss:$0 sm:$0xff] }
 0x66f   :  { %v2200_v10 = vpop.eup %2199 }
 0x670   :  { %v834_v14 = vmul.f32 %v2200_v10, %v2575_v45  ;;  %v871_v16 = vpack.c.bf16 %v862_v5, %v861_v2  ;;  %v856_v17 = vadd.f32 %v1894_v53, %v844_v9  ;;  %v845_v19 = vmul.f32 %v1893_v48, %v833_v4 }
 0x671   :  { %v2202_v18 = vpop.eup %2201  ;;  %v863_v28 = vmax.f32 %v855_v8, 0.0 }
 0x672   :  { %v835_v23 = vmul.f32 %v2202_v18, %v2580_v57  ;;  %2056 = vmatpush3.bf16.msra.mxu1 %v871_v16  ;;  %v864_v26 = vmax.f32 %v856_v17, 0.0  ;;  %v846_v25 = vmul.f32 %v1893_v48, %v834_v14  ;;  %v857_v42 = vadd.f32 %v1894_v53, %v845_v19 }
 0x673   :  { %v2204_v27 = vpop.eup %2203  ;;  %2057 = vmatprep.subr.bf16.mxu1 %v2269_v1 }
 0x674   :  { %v836_v29 = vmul.f32 %v2204_v27, %v2585_v54  ;;  %v872_v30 = vpack.c.bf16 %v864_v26, %v863_v28  ;;  %v858_v31 = vadd.f32 %v1894_v53, %v846_v25  ;;  %v847_v33 = vmul.f32 %v1893_v48, %v835_v23  ;;  %v2620_v54 = vld [vmem:[%s2904_s1 + $0x40] sm:$0xff]  }
 0x675   :  { %v865_v45 = vmax.f32 %v857_v42, 0.0 }
 0x676   :  { %2058 = vmatpush3.bf16.msra.mxu1 %v872_v30  ;;  %v866_v43 = vmax.f32 %v858_v31, 0.0  ;;  %v848_v22 = vmul.f32 %v1893_v48, %v836_v29  ;;  %v859_v44 = vadd.f32 %v1894_v53, %v847_v33  ;;  %v2163_v48 = vld [vmem:[%s2905_s2 + $0x70] sm:$0xff]   ;;  %v1901_v30 = vld [vmem:[%s2906_s3 + $0x8] ss:$0 sm:$0xff]  ;;  %v1902_v33 = vld [vmem:[%s2906_s3 + $0x9] ss:$0 sm:$0xff] }
 0x677   :  { %2059 = vmatprep.subr.bf16.mxu1 %v2269_v1 }
 0x678   :  { %v873_v57 = vpack.c.bf16 %v866_v43, %v865_v45  ;;  %v860_v41 = vadd.f32 %v1894_v53, %v848_v22  ;;  %v867_v47 = vmax.f32 %v859_v44, 0.0  ;;  %v2634_v53 = vpop.permute.xlu1 %926 }
 0x67a   :  { %2060 = vmatpush3.bf16.msra.mxu1 %v873_v57  ;;  %v868_v50 = vmax.f32 %v860_v41, 0.0 }
 0x67b   :  { %2061 = vmatprep.subr.bf16.mxu1 %v2269_v1 }
 0x67c   :  { %v874_v51 = vpack.c.bf16 %v868_v50, %v867_v47 }
 0x67e   :  { %2062 = vmatpush3.bf16.msra.mxu1 %v874_v51 }
 0x67f   :  { %2067 = vmatprep.subr.bf16.mxu1 %v2269_v1 }
 0x681   :  { %2064 = vmatmul.mubr.msk.bf16.vlgmr.msra.gmra.mrb[16].mxu1 %vm474_vm3, %v2620_v54 }
 0x682   :  { %2071 = vmatprep.mubr.msk.bf16.mxu1 %vm2270_vm1, %v2269_v1  ;;  %2068 = vmatpush3.bf16.msra.mxu1 %v2163_v48 }
 0x683   :  { %2069 = vmatprep.subr.bf16.mxu1 %v2269_v1 }
 0x686   :  { %2070 = vmatpush3.bf16.msra.mxu1 %v2164_v49 }
 0x754   :  { %v917_v56 = vpop.f32.mrb[16].mxu1 }
 0x755   :  { %v2065_v58 = vpop.f32.mrb[17].mxu1  ;;  %v934_v59 = vmul.f32 %v2634_v53, %v917_v56 }
 0x756   :  { %v920_v52 = vpop.f32.mrb[18].mxu1 }
 0x757   :  { %v935_v60 = vmul.f32 %v2636_v55, %v920_v52  ;;  %v2066_v63 = vpop.f32.mrb[19].mxu1 }
 0x759   :  { %v936_v62 = vpack.c.bf16 %v935_v60, %v934_v59 }
 0x75b   :  { %2072 = vmatmul.mubr.msk.bf16.vlgmr.msra.gmra.mrb[20].mxu1 %vm201_vm2, %v936_v62 }
 0x75c   :  { %2085 = vmatprep.mubr.msk.bf16.mxu1 %vm35_vm0, %v2337_v15 }
 0x82e   :  { %v995_v0 = vpop.f32.mrb[20].mxu1 }
 0x82f   :  { %v996_v61 = vadd.f32 %v1897_v7, %v995_v0  ;;  %v2073_v2 = vpop.f32.mrb[21].mxu1 }
 0x830   :  { %v998_v4 = vpop.f32.mrb[22].mxu1 }
 0x831   :  { %v999_v5 = vadd.f32 %v1897_v7, %v998_v4  ;;  %v2074_v9 = vpop.f32.mrb[23].mxu1  ;;  %v1004_v8 = vsel %vm201_vm2, %v996_v61, 0.0 }
 0x832   :  { %1005 = vadd.xlane.f32.xlu1 %v1004_v8 }
 0x833   :  { %v1007_v10 = vsel %vm201_vm2, %v999_v5, 0.0 }
 0x834   :  { %1008 = vadd.xlane.f32.xlu0 %v1007_v10 }
 0x84a   :  { %1261 = vrot.lane.b32.xlu0 %v2448_v21, %s2271_s8  ;;  %v2165_v21 = vld [vmem:[%s2905_s2 + $0x20] sm:$0xff]  }
 0x84b   :  { %2076 = vmatpush3.bf16.msra.mxu0 %v2165_v21 }
 0x84c   :  { %2077 = vmatprep.subr.bf16.mxu0 %v2269_v1 }
 0x8bf   :  { %v1006_v15 = vpop.xlane.xlu1 %1005 }
 0x8c0   :  { %v1010_v14 = vmul.f32 0.03125, %v1006_v15 }
 0x8c1   :  { %v1009_v16 = vpop.xlane.xlu0 %1008 }
 0x8c2   :  { %v1012_v17 = vsub.f32 %v996_v61, %v1010_v14  ;;  %v1011_v18 = vmul.f32 0.03125, %v1009_v16 }
 0x8c4   :  { %v1013_v19 = vsub.f32 %v999_v5, %v1011_v18  ;;  %v1014_v23 = vmul.f32 %v1012_v17, %v1012_v17 }
 0x8c5   :  { %v1262_v14 = vpop.permute.xlu0 %1261 }
 0x8c6   :  { %v1016_v28 = vsel %vm201_vm2, %v1014_v23, 0.0  ;;  %v1015_v26 = vmul.f32 %v1013_v19, %v1013_v19 }
 0x8c7   :  { %1017 = vadd.xlane.f32.xlu1 %v1016_v28 }
 0x8c8   :  { %v1019_v25 = vsel %vm201_vm2, %v1015_v26, 0.0 }
 0x8cb   :  { %1020 = vadd.xlane.f32.xlu1 %v1019_v25 }
 0x8dc   :  { %1253 = vrot.lane.b32.xlu1 %v2437_v3, %s2271_s8  ;;  %v2166_v3 = vld [vmem:[%s2905_s2 + $0x28] sm:$0xff]  }
 0x8dd   :  { %2078 = vmatpush3.bf16.msra.mxu0 %v2166_v3 }
 0x8e0   :  { %1255 = vrot.lane.b32.xlu1 %v2442_v13, %s2271_s8 }
 0x8e4   :  { %1257 = vrot.lane.b32.xlu1 %v2439_v6, %s2271_s8 }
 0x8e8   :  { %1259 = vrot.lane.b32.xlu1 %v2446_v20, %s2271_s8 }
 0x8ec   :  { %1263 = vrot.lane.b32.xlu1 %v2451_v24, %s2271_s8 }
 0x954   :  { %v1018_v13 = vpop.xlane.xlu1 %1017 }
 0x955   :  { %v1022_v6 = vmul.f32 0.03125, %v1018_v13 }
 0x957   :  { %v1024_v27 = vadd.f32 1e-05, %v1022_v6 }
 0x958   :  { %v1021_v42 = vpop.xlane.xlu1 %1020 }
 0x959   :  { %2205 = vrsqrt.f32 %v1024_v27  ;;  %v1023_v20 = vmul.f32 0.03125, %v1021_v42 }
 0x95b   :  { %v1025_v29 = vadd.f32 1e-05, %v1023_v20 }
 0x95c   :  { %v1254_v5 = vpop.permute.xlu1 %1253 }
 0x95d   :  { %2207 = vrsqrt.f32 %v1025_v29 }
 0x960   :  { %v1256_v9 = vpop.permute.xlu1 %1255 }
 0x963   :  { %v2206_v24 = vpop.eup %2205 }
 0x964   :  { %v1028_v31 = vmul.f32 %v2206_v24, %v1012_v17  ;;  %v1258_v8 = vpop.permute.xlu1 %1257 }
 0x966   :  { %v1034_v45 = vmul.f32 %v1901_v30, %v1028_v31 }
 0x967   :  { %v2208_v43 = vpop.eup %2207 }
 0x968   :  { %v1040_v22 = vadd.f32 %v1902_v33, %v1034_v45  ;;  %v1029_v44 = vmul.f32 %v2208_v43, %v1013_v19  ;;  %v1260_v10 = vpop.permute.xlu1 %1259 }
 0x96a   :  { %v1035_v57 = vmul.f32 %v1901_v30, %v1029_v44  ;;  %v1042_v41 = vmax.f32 %v1040_v22, 0.0 }
 0x96c   :  { %v1041_v47 = vadd.f32 %v1902_v33, %v1035_v57  ;;  %v2676_v51 = vadd.f32 %v1042_v41, %v2327_v11  ;;  %v1264_v15 = vpop.permute.xlu1 %1263 }
 0x96e   :  { %v1043_v50 = vmax.f32 %v1041_v47, 0.0 }
 0x970   :  { %v2679_v48 = vadd.f32 %v1043_v50, %v2329_v12 }
 0x972   :  { %v1046_v49 = vpack.c.bf16 %v2679_v48, %v2676_v51 }
 0x974   :  { %2080 = vmatmul.mubr.msk.bf16.vlgmr.msra.gmra.mrb[24].mxu0 %vm201_vm2, %v1046_v49 }
 0xa47   :  { %v1100_v56 = vpop.f32.mrb[24].mxu0 }
 0xa48   :  { %v2081_v58 = vpop.f32.mrb[25].mxu0 }
 0xa49   :  { %v1103_v52 = vpop.f32.mrb[26].mxu0 }
 0xa4a   :  { %v1107_v59 = vpack.c.bf16 %v1103_v52, %v1100_v56  ;;  %v2082_v60 = vpop.f32.mrb[27].mxu0 }
 0xa4c   :  { %2083 = vmatprep.subr.bf16.mxu1 %v1107_v59 }
 0xa4d   :  { %2084 = vmatpush3.bf16.msra.mxu1 %v1107_v59 }
 0xa4e   :  { %2129 = vmatprep.subr.bf16.mxu1 %v2269_v1 }
 0xa50   :  { %2086 = vmatmul.mubr.msk.bf16.vlgmr.msra.gmra.mrb[24].mxu1 %vm35_vm0, %v2375_v34 }
 0xa51   :  { %2089 = vmatprep.mubr.msk.bf16.mxu1 %vm35_vm0, %v2380_v35 }
 0xa58   :  { %2090 = vmatmul.mubr.msk.bf16.gmra.mrb[28].mxu1 %vm35_vm0, %v2390_v36 }
 0xa59   :  { %2093 = vmatprep.mubr.msk.bf16.mxu1 %vm35_vm0, %v2395_v37 }
 0xa60   :  { %2094 = vmatmul.mubr.msk.bf16.gmra.mrb[32].mxu1 %vm35_vm0, %v2404_v38 }
 0xa61   :  { %2097 = vmatprep.mubr.msk.bf16.mxu1 %vm35_vm0, %v2409_v39 }
 0xa68   :  { %2098 = vmatmul.mubr.msk.bf16.gmra.mrb[36].mxu1 %vm35_vm0, %v2418_v40 }
 0xa69   :  { %2133 = vmatprep.mubr.msk.bf16.mxu1 %vm2270_vm1, %v2269_v1 }
 0xb23   :  { %v2087_v11 = vpop.f32.mrb[24].mxu1 }
 0xb24   :  { %v1142_v12 = vpop.f32.mrb[25].mxu1 }
 0xb25   :  { %v2088_v34 = vpop.f32.mrb[26].mxu1 }
 0xb26   :  { %v1145_v35 = vpop.f32.mrb[27].mxu1 }
 0xb2b   :  { %v2091_v36 = vpop.f32.mrb[28].mxu1 }
 0xb2c   :  { %v1158_v63 = vpop.f32.mrb[29].mxu1 }
 0xb2d   :  { %v2092_v62 = vpop.f32.mrb[30].mxu1 }
 0xb2e   :  { %v1161_v37 = vpop.f32.mrb[31].mxu1 }
 0xb33   :  { %v2095_v7 = vpop.f32.mrb[32].mxu1 }
 0xb34   :  { %1217 = vrot.lane.b32.xlu1 %v2095_v7, %s2271_s8  ;;  %v1174_v38 = vpop.f32.mrb[33].mxu1 }
 0xb35   :  { %v2096_v0 = vpop.f32.mrb[34].mxu1 }
 0xb36   :  { %v1177_v39 = vpop.f32.mrb[35].mxu1 }
 0xb37   :  { %1215 = vrot.lane.b32.xlu0 %v1177_v39, %s2271_s8 }
 0xb38   :  { %1213 = vrot.lane.b32.xlu1 %v1174_v38, %s2271_s8 }
 0xb3b   :  { %v2099_v40 = vpop.f32.mrb[36].mxu1 }
 0xb3c   :  { %1219 = vrot.lane.b32.xlu1 %v2096_v0, %s2271_s8  ;;  %1225 = vrot.lane.b32.xlu0 %v2099_v40, %s2271_s8  ;;  %v1190_v61 = vpop.f32.mrb[37].mxu1 }
 0xb3d   :  { %v2100_v2 = vpop.f32.mrb[38].mxu1 }
 0xb3e   :  { %v1193_v4 = vpop.f32.mrb[39].mxu1 }
 0xb40   :  { %1221 = vrot.lane.b32.xlu0 %v1190_v61, %s2271_s8  ;;  %1227 = vrot.lane.b32.xlu1 %v2100_v2, %s2271_s8 }
 0xb44   :  { %1265 = vrot.lane.b32.xlu0 %v2457_v32, %s2271_s8  ;;  %1223 = vrot.lane.b32.xlu1 %v1193_v4, %s2271_s8 }
 0xb48   :  { %1267 = vrot.lane.b32.xlu1 %v2462_v46, %s2271_s8  ;;  %s1843_s8 = sshll.u32 %s2273_s21, 4  ;;  %s1844_s8 = int_to_ptr.vmem [resolvable:$true] %s1843_s8 }
 0xb49   :  { %s2245_s22 = scalar_lea.vmem %s1844_s8, 256  ;;  %p2250_p1 = scmp.lt.s32.totalorder %s1844_s8, %s1844_s8 }
 0xb4a   :  { %p2246_p0 = scmp.ne.s32.totalorder %s1844_s8, %s2245_s22  ;;  %p2251_p2 = scmp.lt.s32.totalorder %s2245_s22, %s2245_s22 }
 0xb4c   :  { %p2252_p3 = por %p2251_p2, %p2250_p1 }
 0xb4e   :  { %p2253_p4 = pnand %p2252_p3, %p2246_p0 }
 0xba6   :  { %v1218_v16 = vpop.permute.xlu1 %1217 }
 0xba7   :  { %v1239_v23 = vadd.f32 %v2087_v11, %v1218_v16 }
 0xba9   :  { %v1216_v17 = vpop.permute.xlu0 %1215  ;;  %v1279_v6 = vadd.f32 %v1258_v8, %v1239_v23 }
 0xbaa   :  { %v1238_v18 = vadd.f32 %v1216_v17, %v1145_v35  ;;  %v1214_v19 = vpop.permute.xlu1 %1213 }
 0xbab   :  { %v1237_v28 = vadd.f32 %v1214_v19, %v1142_v12  ;;  %v1293_v29 = vsel %vm474_vm3, %v1279_v6, 0.0 }
 0xbac   :  { %v1278_v26 = vadd.f32 %v1256_v9, %v1238_v18 }
 0xbad   :  { %v1277_v25 = vadd.f32 %v1254_v5, %v1237_v28 }
 0xbae   :  { %v1220_v32 = vpop.permute.xlu1 %1219  ;;  %v1226_v21 = vpop.permute.xlu0 %1225  ;;  %v1290_v3 = vsel %vm474_vm3, %v1278_v26, 0.0 }
 0xbaf   :  { %v1240_v13 = vadd.f32 %v2088_v34, %v1220_v32  ;;  %1291 = vadd.xlane.f32.xlu1 %v1290_v3  ;;  %v1287_v46 = vsel %vm474_vm3, %v1277_v25, 0.0  ;;  %v1243_v30 = vadd.f32 %v2091_v36, %v1226_v21 }
 0xbb0   :  { %1288 = vadd.xlane.f32.xlu0 %v1287_v46 }
 0xbb1   :  { %v1280_v24 = vadd.f32 %v1260_v10, %v1240_v13 }
 0xbb2   :  { %v1222_v27 = vpop.permute.xlu0 %1221  ;;  %v1228_v42 = vpop.permute.xlu1 %1227 }
 0xbb3   :  { %v1241_v20 = vadd.f32 %v1222_v27, %v1158_v63  ;;  %v1296_v44 = vsel %vm474_vm3, %v1280_v24, 0.0  ;;  %v1244_v41 = vadd.f32 %v2092_v62, %v1228_v42 }
 0xbb4   :  { %1294 = vadd.xlane.f32.xlu0 %v1293_v29  ;;  %v2168_v29 = vld [vmem:[%s2905_s2 + $0x58] sm:$0xff]  }
 0xbb5   :  { %v1281_v31 = vadd.f32 %v1262_v14, %v1241_v20  ;;  %v2167_v20 = vld [vmem:[%s2905_s2 + $0x50] sm:$0xff]  }
 0xbb6   :  { %v1266_v33 = vpop.permute.xlu0 %1265  ;;  %v1224_v45 = vpop.permute.xlu1 %1223  ;;  %2101 = vmatprep.subr.bf16.mxu0 %v2167_v20 }
 0xbb7   :  { %v1283_v43 = vadd.f32 %v1266_v33, %v1243_v30  ;;  %v1242_v22 = vadd.f32 %v1224_v45, %v1161_v37  ;;  %v1299_v57 = vsel %vm474_vm3, %v1281_v31, 0.0  ;;  %2102 = vmatpush3.bf16.msra.mxu0 %v2167_v20  ;;  %v2170_v30 = vld [vmem:[%s2905_s2 + $0x68] sm:$0xff]  }
 0xbb8   :  { %1297 = vadd.xlane.f32.xlu0 %v1296_v44  ;;  %1300 = vadd.xlane.f32.xlu1 %v1299_v57 }
 0xbb9   :  { %v1282_v47 = vadd.f32 %v1264_v15, %v1242_v22  ;;  %v1305_v56 = vsel %vm474_vm3, %v1283_v43, 0.0  ;;  %2103 = vmatprep.subr.bf16.mxu0 %v2168_v29 }
 0xbba   :  { %v1268_v50 = vpop.permute.xlu1 %1267 }
 0xbbb   :  { %v1284_v49 = vadd.f32 %v1268_v50, %v1244_v41  ;;  %v1302_v58 = vsel %vm474_vm3, %v1282_v47, 0.0  ;;  %2104 = vmatpush3.bf16.msra.mxu0 %v2168_v29 }
 0xbbc   :  { %1306 = vadd.xlane.f32.xlu1 %v1305_v56  ;;  %1303 = vadd.xlane.f32.xlu0 %v1302_v58 }
 0xbbd   :  { %v1308_v52 = vsel %vm474_vm3, %v1284_v49, 0.0 }
 0xbc0   :  { %1309 = vadd.xlane.f32.xlu0 %v1308_v52 }
 0xc3c   :  { %v1292_v59 = vpop.xlane.xlu1 %1291 }
 0xc3d   :  { %v1312_v60 = vmul.f32 0.015625, %v1292_v59  ;;  %v1289_v11 = vpop.xlane.xlu0 %1288 }
 0xc3e   :  { %v1311_v12 = vmul.f32 0.015625, %v1289_v11 }
 0xc3f   :  { %v2721_v34 = vsub.f32 %v1278_v26, %v1312_v60 }
 0xc40   :  { %v2723_v35 = vsub.f32 %v1277_v25, %v1311_v12 }
 0xc41   :  { %v1295_v36 = vpop.xlane.xlu0 %1294  ;;  %v1328_v63 = vmul.f32 %v2721_v34, %v2721_v34 }
 0xc42   :  { %v1313_v62 = vmul.f32 0.015625, %v1295_v36  ;;  %v1327_v37 = vmul.f32 %v2723_v35, %v2723_v35 }
 0xc43   :  { %v1338_v7 = vsel %vm474_vm3, %v1328_v63, 0.0 }
 0xc44   :  { %v2730_v38 = vsub.f32 %v1279_v6, %v1313_v62  ;;  %1339 = vadd.xlane.f32.xlu0 %v1338_v7  ;;  %v1335_v0 = vsel %vm474_vm3, %v1327_v37, 0.0  ;;  %v1914_v62 = vld [vmem:[%s2906_s3 + $0xa] ss:$0 sm:$0xff] }
 0xc45   :  { %v1298_v39 = vpop.xlane.xlu0 %1297  ;;  %1336 = vadd.xlane.f32.xlu1 %v1335_v0  ;;  %v1301_v40 = vpop.xlane.xlu1 %1300 }
 0xc46   :  { %v1314_v61 = vmul.f32 0.015625, %v1298_v39  ;;  %v1315_v2 = vmul.f32 0.015625, %v1301_v40  ;;  %v1329_v4 = vmul.f32 %v2730_v38, %v2730_v38 }
 0xc48   :  { %v2735_v5 = vsub.f32 %v1280_v24, %v1314_v61  ;;  %v2737_v9 = vsub.f32 %v1281_v31, %v1315_v2  ;;  %v1341_v8 = vsel %vm474_vm3, %v1329_v4, 0.0  ;;  %v2169_v24 = vld [vmem:[%s2905_s2 + $0x60] sm:$0xff]   ;;  %v1915_v2 = vld [vmem:[%s2906_s3 + $0xb] ss:$0 sm:$0xff] }
 0xc49   :  { %1342 = vadd.xlane.f32.xlu1 %v1341_v8  ;;  %v1304_v10 = vpop.xlane.xlu0 %1303  ;;  %v1307_v15 = vpop.xlane.xlu1 %1306  ;;  %2105 = vmatprep.subr.bf16.mxu0 %v2169_v24 }
 0xc4a   :  { %v1316_v14 = vmul.f32 0.015625, %v1304_v10  ;;  %v1317_v16 = vmul.f32 0.015625, %v1307_v15  ;;  %v1330_v17 = vmul.f32 %v2735_v5, %v2735_v5  ;;  %v1331_v18 = vmul.f32 %v2737_v9, %v2737_v9  ;;  %2106 = vmatpush3.bf16.msra.mxu0 %v2169_v24 }
 0xc4b   :  { %2107 = vmatprep.subr.bf16.mxu0 %v2170_v30 }
 0xc4c   :  { %v2744_v19 = vsub.f32 %v1282_v47, %v1316_v14  ;;  %v2746_v23 = vsub.f32 %v1283_v43, %v1317_v16  ;;  %v1344_v28 = vsel %vm474_vm3, %v1330_v17, 0.0  ;;  %v1347_v26 = vsel %vm474_vm3, %v1331_v18, 0.0 }
 0xc4d   :  { %v1310_v25 = vpop.xlane.xlu0 %1309  ;;  %1345 = vadd.xlane.f32.xlu0 %v1344_v28  ;;  %1348 = vadd.xlane.f32.xlu1 %v1347_v26 }
 0xc4e   :  { %v1318_v32 = vmul.f32 0.015625, %v1310_v25  ;;  %v1332_v21 = vmul.f32 %v2744_v19, %v2744_v19  ;;  %v1333_v3 = vmul.f32 %v2746_v23, %v2746_v23  ;;  %2108 = vmatpush3.bf16.msra.mxu0 %v2170_v30 }
 0xc4f   :  { %2117 = vmatprep.subr.bf16.mxu0 %v2269_v1 }
 0xc50   :  { %v2754_v13 = vsub.f32 %v1284_v49, %v1318_v32  ;;  %v1350_v46 = vsel %vm474_vm3, %v1332_v21, 0.0  ;;  %v1353_v6 = vsel %vm474_vm3, %v1333_v3, 0.0 }
 0xc51   :  { %1351 = vadd.xlane.f32.xlu0 %v1350_v46  ;;  %1354 = vadd.xlane.f32.xlu1 %v1353_v6 }
 0xc52   :  { %v1334_v27 = vmul.f32 %v2754_v13, %v2754_v13 }
 0xc54   :  { %v1356_v42 = vsel %vm474_vm3, %v1334_v27, 0.0 }
 0xc55   :  { %1357 = vadd.xlane.f32.xlu0 %v1356_v42 }
 0xcd1   :  { %v1340_v31 = vpop.xlane.xlu0 %1339 }
 0xcd2   :  { %v1360_v33 = vmul.f32 0.015625, %v1340_v31  ;;  %v1337_v45 = vpop.xlane.xlu1 %1336 }
 0xcd3   :  { %v1359_v43 = vmul.f32 0.015625, %v1337_v45 }
 0xcd4   :  { %v1368_v22 = vadd.f32 1e-05, %v1360_v33 }
 0xcd5   :  { %v1367_v44 = vadd.f32 1e-05, %v1359_v43 }
 0xcd6   :  { %2209 = vrsqrt.f32 %v1368_v22  ;;  %v1343_v57 = vpop.xlane.xlu1 %1342 }
 0xcd7   :  { %2211 = vrsqrt.f32 %v1367_v44  ;;  %v1361_v41 = vmul.f32 0.015625, %v1343_v57 }
 0xcd9   :  { %v1369_v47 = vadd.f32 1e-05, %v1361_v41 }
 0xcda   :  { %v1346_v50 = vpop.xlane.xlu0 %1345  ;;  %v1349_v49 = vpop.xlane.xlu1 %1348 }
 0xcdb   :  { %2213 = vrsqrt.f32 %v1369_v47  ;;  %v1362_v56 = vmul.f32 0.015625, %v1346_v50  ;;  %v1363_v58 = vmul.f32 0.015625, %v1349_v49 }
 0xcdd   :  { %v1370_v52 = vadd.f32 1e-05, %v1362_v56  ;;  %v1371_v59 = vadd.f32 1e-05, %v1363_v58 }
 0xcde   :  { %v1352_v60 = vpop.xlane.xlu0 %1351  ;;  %v1355_v11 = vpop.xlane.xlu1 %1354 }
 0xcdf   :  { %2215 = vrsqrt.f32 %v1370_v52  ;;  %v1364_v12 = vmul.f32 0.015625, %v1352_v60  ;;  %v1365_v36 = vmul.f32 0.015625, %v1355_v11 }
 0xce0   :  { %v2210_v63 = vpop.eup %2209  ;;  %2217 = vrsqrt.f32 %v1371_v59 }
 0xce1   :  { %v2212_v37 = vpop.eup %2211  ;;  %v1384_v7 = vmul.f32 %v2210_v63, %v2721_v34  ;;  %v1372_v0 = vadd.f32 1e-05, %v1364_v12  ;;  %v1373_v39 = vadd.f32 1e-05, %v1365_v36 }
 0xce2   :  { %v1383_v40 = vmul.f32 %v2212_v37, %v2723_v35  ;;  %v1358_v61 = vpop.xlane.xlu0 %1357 }
 0xce3   :  { %2219 = vrsqrt.f32 %v1372_v0  ;;  %v1366_v4 = vmul.f32 0.015625, %v1358_v61  ;;  %v1396_v8 = vmul.f32 %v1914_v62, %v1384_v7 }
 0xce4   :  { %2221 = vrsqrt.f32 %v1373_v39  ;;  %v1395_v10 = vmul.f32 %v1914_v62, %v1383_v40 }
 0xce5   :  { %v2214_v15 = vpop.eup %2213  ;;  %v1374_v14 = vadd.f32 1e-05, %v1366_v4  ;;  %v1408_v16 = vadd.f32 %v1915_v2, %v1396_v8 }
 0xce6   :  { %v1385_v17 = vmul.f32 %v2214_v15, %v2730_v38  ;;  %v1407_v34 = vadd.f32 %v1915_v2, %v1395_v10 }
 0xce7   :  { %2223 = vrsqrt.f32 %v1374_v14  ;;  %v1416_v18 = vmax.f32 %v1408_v16, 0.0 }
 0xce8   :  { %v1397_v28 = vmul.f32 %v1914_v62, %v1385_v17  ;;  %v1415_v35 = vmax.f32 %v1407_v34, 0.0 }
 0xce9   :  { %v2216_v26 = vpop.eup %2215 }
 0xcea   :  { %v2218_v25 = vpop.eup %2217  ;;  %v1386_v32 = vmul.f32 %v2216_v26, %v2735_v5  ;;  %v1423_v21 = vpack.c.bf16 %v1416_v18, %v1415_v35  ;;  %v1409_v6 = vadd.f32 %v1915_v2, %v1397_v28 }
 0xceb   :  { %v1387_v3 = vmul.f32 %v2218_v25, %v2737_v9 }
 0xcec   :  { %v1398_v46 = vmul.f32 %v1914_v62, %v1386_v32  ;;  %2109 = vmatprep.mubr.msk.bf16.mxu0 %vm474_vm3, %v1423_v21  ;;  %v1417_v30 = vmax.f32 %v1409_v6, 0.0 }
 0xced   :  { %v2220_v27 = vpop.eup %2219  ;;  %v1399_v42 = vmul.f32 %v1914_v62, %v1387_v3 }
 0xcee   :  { %v2222_v20 = vpop.eup %2221  ;;  %v1388_v38 = vmul.f32 %v2220_v27, %v2744_v19  ;;  %v1410_v29 = vadd.f32 %v1915_v2, %v1398_v46 }
 0xcef   :  { %v1389_v24 = vmul.f32 %v2222_v20, %v2746_v23  ;;  %v1411_v45 = vadd.f32 %v1915_v2, %v1399_v42 }
 0xcf0   :  { %v1418_v31 = vmax.f32 %v1410_v29, 0.0  ;;  %v1400_v33 = vmul.f32 %v1914_v62, %v1388_v38 }
 0xcf1   :  { %v2224_v5 = vpop.eup %2223  ;;  %v1401_v43 = vmul.f32 %v1914_v62, %v1389_v24  ;;  %v1419_v57 = vmax.f32 %v1411_v45, 0.0 }
 0xcf2   :  { %v1390_v9 = vmul.f32 %v2224_v5, %v2754_v13  ;;  %v1424_v22 = vpack.c.bf16 %v1418_v31, %v1417_v30  ;;  %v1412_v44 = vadd.f32 %v1915_v2, %v1400_v33  ;;  %v1916_v13 = vld [vmem:[%s2906_s3 + $0xc] ss:$0 sm:$0xff] }
 0xcf3   :  { %v1413_v50 = vadd.f32 %v1915_v2, %v1401_v43 }
 0xcf4   :  { %2110 = vmatmul.mubr.msk.bf16.vlgmr.msra.gmra.mrb[28].mxu0 %vm474_vm3, %v1424_v22  ;;  %v1420_v41 = vmax.f32 %v1412_v44, 0.0  ;;  %v1402_v47 = vmul.f32 %v1914_v62, %v1390_v9 }
 0xcf5   :  { %v1421_v23 = vmax.f32 %v1413_v50, 0.0 }
 0xcf6   :  { %v1425_v19 = vpack.c.bf16 %v1420_v41, %v1419_v57  ;;  %v1414_v49 = vadd.f32 %v1915_v2, %v1402_v47 }
 0xcf8   :  { %2113 = vmatprep.mubr.msk.bf16.mxu0 %vm474_vm3, %v1425_v19  ;;  %v1422_v56 = vmax.f32 %v1414_v49, 0.0 }
 0xcfa   :  { %v1426_v58 = vpack.c.bf16 %v1422_v56, %v1421_v23 }
 0xcfc   :  { %2114 = vmatmul.mubr.msk.bf16.gmra.mrb[32].mxu0 %vm474_vm3, %v1426_v58 }
 0xcfd   :  { %2125 = vmatprep.mubr.msk.bf16.mxu0 %vm2270_vm1, %v2269_v1 }
 0xdc7   :  { %v2111_v52 = vpop.f32.mrb[28].mxu0 }
 0xdc8   :  { %v1510_v59 = vpop.f32.mrb[29].mxu0  ;;  %v1519_v36 = vadd.f32 %v2111_v52, %v1916_v13 }
 0xdc9   :  { %v1511_v60 = vadd.f32 %v1916_v13, %v1510_v59  ;;  %v2112_v11 = vpop.f32.mrb[30].mxu0 }
 0xdca   :  { %v1513_v12 = vpop.f32.mrb[31].mxu0  ;;  %v1522_v37 = vadd.f32 %v2112_v11, %v1916_v13  ;;  %v1549_v39 = vsel %vm201_vm2, %v1519_v36, 0.0 }
 0xdcb   :  { %v1514_v63 = vadd.f32 %v1916_v13, %v1513_v12  ;;  %v1543_v62 = vsel %vm201_vm2, %v1511_v60, 0.0 }
 0xdcc   :  { %1544 = vadd.xlane.f32.xlu1 %v1543_v62  ;;  %v1552_v4 = vsel %vm201_vm2, %v1522_v37, 0.0  ;;  %v2172_v62 = vld [vmem:[%s2905_s2 + $0x88] sm:$0xff]  }
 0xdcd   :  { %v1546_v7 = vsel %vm201_vm2, %v1514_v63, 0.0 }
 0xdce   :  { %1547 = vadd.xlane.f32.xlu0 %v1546_v7 }
 0xdcf   :  { %v2115_v0 = vpop.f32.mrb[32].mxu0 }
 0xdd0   :  { %1550 = vadd.xlane.f32.xlu1 %v1549_v39  ;;  %v1526_v40 = vpop.f32.mrb[33].mxu0  ;;  %v1535_v10 = vadd.f32 %v2115_v0, %v1916_v13 }
 0xdd1   :  { %v1527_v61 = vadd.f32 %v1916_v13, %v1526_v40  ;;  %v2116_v2 = vpop.f32.mrb[34].mxu0 }
 0xdd2   :  { %1553 = vadd.xlane.f32.xlu0 %v1552_v4  ;;  %v1529_v8 = vpop.f32.mrb[35].mxu0  ;;  %v1538_v16 = vadd.f32 %v2116_v2, %v1916_v13  ;;  %v1561_v34 = vsel %vm201_vm2, %v1535_v10, 0.0 }
 0xdd3   :  { %v1530_v15 = vadd.f32 %v1916_v13, %v1529_v8  ;;  %v1555_v14 = vsel %vm201_vm2, %v1527_v61, 0.0 }
 0xdd4   :  { %1556 = vadd.xlane.f32.xlu1 %v1555_v14  ;;  %v1564_v18 = vsel %vm201_vm2, %v1538_v16, 0.0 }
 0xdd5   :  { %v1558_v17 = vsel %vm201_vm2, %v1530_v15, 0.0 }
 0xdd6   :  { %1559 = vadd.xlane.f32.xlu0 %v1558_v17 }
 0xdd8   :  { %1562 = vadd.xlane.f32.xlu1 %v1561_v34 }
 0xdda   :  { %1565 = vadd.xlane.f32.xlu0 %v1564_v18 }
 0xe59   :  { %v1545_v28 = vpop.xlane.xlu1 %1544 }
 0xe5a   :  { %v1567_v35 = vmul.f32 0.03125, %v1545_v28 }
 0xe5b   :  { %v1548_v26 = vpop.xlane.xlu0 %1547 }
 0xe5c   :  { %v2805_v25 = vsub.f32 %v1511_v60, %v1567_v35  ;;  %v1568_v32 = vmul.f32 0.03125, %v1548_v26 }
 0xe5d   :  { %v1551_v21 = vpop.xlane.xlu1 %1550 }
 0xe5e   :  { %v2807_v3 = vsub.f32 %v1514_v63, %v1568_v32  ;;  %v1569_v46 = vmul.f32 0.03125, %v1551_v21  ;;  %v1583_v6 = vmul.f32 %v2805_v25, %v2805_v25  ;;  %v2171_v63 = vld [vmem:[%s2905_s2 + $0x80] sm:$0xff]  }
 0xe5f   :  { %v1554_v27 = vpop.xlane.xlu0 %1553  ;;  %2130 = vmatpush3.bf16.msra.mxu1 %v2171_v63 }
 0xe60   :  { %v2811_v42 = vsub.f32 %v1519_v36, %v1569_v46  ;;  %v1570_v20 = vmul.f32 0.03125, %v1554_v27  ;;  %v1591_v38 = vsel %vm201_vm2, %v1583_v6, 0.0  ;;  %v1584_v29 = vmul.f32 %v2807_v3, %v2807_v3  ;;  %2131 = vmatprep.subr.bf16.mxu1 %v2269_v1 }
 0xe61   :  { %1592 = vadd.xlane.f32.xlu1 %v1591_v38  ;;  %v1557_v24 = vpop.xlane.xlu1 %1556 }
 0xe62   :  { %v2816_v30 = vsub.f32 %v1522_v37, %v1570_v20  ;;  %v1571_v31 = vmul.f32 0.03125, %v1557_v24  ;;  %v1594_v33 = vsel %vm201_vm2, %v1584_v29, 0.0  ;;  %v1585_v45 = vmul.f32 %v2811_v42, %v2811_v42  ;;  %v1925_v20 = vld [vmem:[%s2906_s3 + $0xd] ss:$0 sm:$0xff] }
 0xe63   :  { %1595 = vadd.xlane.f32.xlu0 %v1594_v33  ;;  %v1560_v5 = vpop.xlane.xlu0 %1559  ;;  %2132 = vmatpush3.bf16.msra.mxu1 %v2172_v62 }
 0xe64   :  { %v2821_v43 = vsub.f32 %v1527_v61, %v1571_v31  ;;  %v1572_v9 = vmul.f32 0.03125, %v1560_v5  ;;  %v1597_v22 = vsel %vm201_vm2, %v1585_v45, 0.0  ;;  %v1586_v44 = vmul.f32 %v2816_v30, %v2816_v30  ;;  %v1926_v31 = vld [vmem:[%s2906_s3 + $0xe] ss:$0 sm:$0xff] }
 0xe65   :  { %1598 = vadd.xlane.f32.xlu1 %v1597_v22  ;;  %v1563_v57 = vpop.xlane.xlu1 %1562 }
 0xe66   :  { %v2826_v41 = vsub.f32 %v1530_v15, %v1572_v9  ;;  %v1573_v47 = vmul.f32 0.03125, %v1563_v57  ;;  %v1600_v50 = vsel %vm201_vm2, %v1586_v44, 0.0  ;;  %v1587_v19 = vmul.f32 %v2821_v43, %v2821_v43 }
 0xe67   :  { %1601 = vadd.xlane.f32.xlu0 %v1600_v50  ;;  %v1566_v49 = vpop.xlane.xlu0 %1565 }
 0xe68   :  { %v2831_v23 = vsub.f32 %v1535_v10, %v1573_v47  ;;  %v1574_v56 = vmul.f32 0.03125, %v1566_v49  ;;  %v1603_v58 = vsel %vm201_vm2, %v1587_v19, 0.0  ;;  %v1588_v13 = vmul.f32 %v2826_v41, %v2826_v41 }
 0xe69   :  { %1604 = vadd.xlane.f32.xlu1 %v1603_v58 }
 0xe6a   :  { %v2836_v52 = vsub.f32 %v1538_v16, %v1574_v56  ;;  %v1606_v59 = vsel %vm201_vm2, %v1588_v13, 0.0  ;;  %v1589_v60 = vmul.f32 %v2831_v23, %v2831_v23 }
 0xe6b   :  { %1607 = vadd.xlane.f32.xlu0 %v1606_v59 }
 0xe6c   :  { %v1609_v11 = vsel %vm201_vm2, %v1589_v60, 0.0  ;;  %v1590_v12 = vmul.f32 %v2836_v52, %v2836_v52 }
 0xe6d   :  { %1610 = vadd.xlane.f32.xlu1 %v1609_v11 }
 0xe6e   :  { %v1612_v36 = vsel %vm201_vm2, %v1590_v12, 0.0 }
 0xe6f   :  { %1613 = vadd.xlane.f32.xlu0 %v1612_v36 }
 0xeee   :  { %v1593_v37 = vpop.xlane.xlu1 %1592 }
 0xeef   :  { %v1615_v7 = vmul.f32 0.03125, %v1593_v37 }
 0xef0   :  { %v1596_v0 = vpop.xlane.xlu0 %1595 }
 0xef1   :  { %v1623_v39 = vadd.f32 1e-05, %v1615_v7  ;;  %v1616_v40 = vmul.f32 0.03125, %v1596_v0 }
 0xef2   :  { %v1599_v61 = vpop.xlane.xlu1 %1598 }
 0xef3   :  { %2225 = vrsqrt.f32 %v1623_v39  ;;  %v1624_v2 = vadd.f32 1e-05, %v1616_v40  ;;  %v1617_v4 = vmul.f32 0.03125, %v1599_v61 }
 0xef4   :  { %v1602_v8 = vpop.xlane.xlu0 %1601 }
 0xef5   :  { %2227 = vrsqrt.f32 %v1624_v2  ;;  %v1625_v10 = vadd.f32 1e-05, %v1617_v4  ;;  %v1618_v15 = vmul.f32 0.03125, %v1602_v8 }
 0xef6   :  { %v1605_v14 = vpop.xlane.xlu1 %1604 }
 0xef7   :  { %2229 = vrsqrt.f32 %v1625_v10  ;;  %v1626_v16 = vadd.f32 1e-05, %v1618_v15  ;;  %v1619_v17 = vmul.f32 0.03125, %v1605_v14 }
 0xef8   :  { %v1608_v34 = vpop.xlane.xlu0 %1607 }
 0xef9   :  { %2231 = vrsqrt.f32 %v1626_v16  ;;  %v1627_v18 = vadd.f32 1e-05, %v1619_v17  ;;  %v1620_v28 = vmul.f32 0.03125, %v1608_v34 }
 0xefa   :  { %v1611_v35 = vpop.xlane.xlu1 %1610 }
 0xefb   :  { %2233 = vrsqrt.f32 %v1627_v18  ;;  %v1628_v26 = vadd.f32 1e-05, %v1620_v28  ;;  %v1621_v32 = vmul.f32 0.03125, %v1611_v35 }
 0xefc   :  { %v1614_v21 = vpop.xlane.xlu0 %1613 }
 0xefd   :  { %v2226_v46 = vpop.eup %2225  ;;  %2235 = vrsqrt.f32 %v1628_v26  ;;  %v1629_v6 = vadd.f32 1e-05, %v1621_v32  ;;  %v1622_v27 = vmul.f32 0.03125, %v1614_v21 }
 0xefe   :  { %v1639_v38 = vmul.f32 %v2226_v46, %v2805_v25 }
 0xeff   :  { %v2228_v29 = vpop.eup %2227  ;;  %2237 = vrsqrt.f32 %v1629_v6  ;;  %v1630_v24 = vadd.f32 1e-05, %v1622_v27 }
 0xf00   :  { %v1640_v33 = vmul.f32 %v2228_v29, %v2807_v3  ;;  %v1651_v45 = vmul.f32 %v1925_v20, %v1639_v38 }
 0xf01   :  { %v2230_v5 = vpop.eup %2229  ;;  %2239 = vrsqrt.f32 %v1630_v24 }
 0xf02   :  { %v1641_v9 = vmul.f32 %v2230_v5, %v2811_v42  ;;  %v1652_v22 = vmul.f32 %v1925_v20, %v1640_v33  ;;  %v1663_v44 = vadd.f32 %v1926_v31, %v1651_v45 }
 0xf03   :  { %v2232_v57 = vpop.eup %2231 }
 0xf04   :  { %v1642_v47 = vmul.f32 %v2232_v57, %v2816_v30  ;;  %v1664_v25 = vadd.f32 %v1926_v31, %v1652_v22  ;;  %v1653_v50 = vmul.f32 %v1925_v20, %v1641_v9  ;;  %v1671_v49 = vmax.f32 %v1663_v44, 0.0 }
 0xf05   :  { %v2234_v19 = vpop.eup %2233 }
 0xf06   :  { %v1643_v56 = vmul.f32 %v2234_v19, %v2821_v43  ;;  %v1672_v58 = vmax.f32 %v1664_v25, 0.0  ;;  %v1654_v13 = vmul.f32 %v1925_v20, %v1642_v47  ;;  %v1665_v59 = vadd.f32 %v1926_v31, %v1653_v50 }
 0xf07   :  { %v2236_v3 = vpop.eup %2235 }
 0xf08   :  { %v1644_v60 = vmul.f32 %v2236_v3, %v2826_v41  ;;  %v1679_v11 = vpack.c.bf16 %v1672_v58, %v1671_v49  ;;  %v1666_v12 = vadd.f32 %v1926_v31, %v1654_v13  ;;  %v1655_v36 = vmul.f32 %v1925_v20, %v1643_v56  ;;  %v1932_v56 = vld [vmem:[%s2906_s3 + $0x10] ss:$0 sm:$0xff] }
 0xf09   :  { %v2238_v42 = vpop.eup %2237  ;;  %v1673_v30 = vmax.f32 %v1665_v59, 0.0  ;;  %v1933_v59 = vld [vmem:[%s2906_s3 + $0x11] ss:$0 sm:$0xff] }
 0xf0a   :  { %v1645_v63 = vmul.f32 %v2238_v42, %v2831_v23  ;;  %2118 = vmatpush3.bf16.msra.mxu0 %v1679_v11  ;;  %v1674_v62 = vmax.f32 %v1666_v12, 0.0  ;;  %v1656_v37 = vmul.f32 %v1925_v20, %v1644_v60  ;;  %v1667_v43 = vadd.f32 %v1926_v31, %v1655_v36 }
 0xf0b   :  { %v2240_v7 = vpop.eup %2239  ;;  %2119 = vmatprep.subr.bf16.mxu0 %v2269_v1 }
 0xf0c   :  { %v1646_v0 = vmul.f32 %v2240_v7, %v2836_v52  ;;  %v1680_v39 = vpack.c.bf16 %v1674_v62, %v1673_v30  ;;  %v1668_v40 = vadd.f32 %v1926_v31, %v1656_v37  ;;  %v1657_v61 = vmul.f32 %v1925_v20, %v1645_v63 }
 0xf0d   :  { %v1675_v41 = vmax.f32 %v1667_v43, 0.0 }
 0xf0e   :  { %2120 = vmatpush3.bf16.msra.mxu0 %v1680_v39  ;;  %v1676_v2 = vmax.f32 %v1668_v40, 0.0  ;;  %v1658_v4 = vmul.f32 %v1925_v20, %v1646_v0  ;;  %v1669_v8 = vadd.f32 %v1926_v31, %v1657_v61 }
 0xf0f   :  { %2121 = vmatprep.subr.bf16.mxu0 %v2269_v1 }
 0xf10   :  { %v1681_v23 = vpack.c.bf16 %v1676_v2, %v1675_v41  ;;  %v1670_v10 = vadd.f32 %v1926_v31, %v1658_v4  ;;  %v1677_v15 = vmax.f32 %v1669_v8, 0.0 }
 0xf12   :  { %2122 = vmatpush3.bf16.msra.mxu0 %v1681_v23  ;;  %v1678_v14 = vmax.f32 %v1670_v10, 0.0 }
 0xf13   :  { %2123 = vmatprep.subr.bf16.mxu0 %v2269_v1  ;;  %v1928_v1 = vld [vmem:[%s2906_s3 + $0xf] ss:$0 sm:$0xff] }
 0xf14   :  { %v1682_v16 = vpack.c.bf16 %v1678_v14, %v1677_v15 }
 0xf16   :  { %2124 = vmatpush3.bf16.msra.mxu0 %v1682_v16 }
 0xf19   :  { %2126 = vmatmul.mubr.msk.bf16.vlgmr.msra.gmra.mrb[36].mxu0 %vm474_vm3, %v2620_v54 }
 0xfec   :  { %v1717_v52 = vpop.f32.mrb[36].mxu0 }
 0xfed   :  { %v2127_v17 = vpop.f32.mrb[37].mxu0  ;;  %v1724_v18 = vmul.f32 %v1717_v52, %v2634_v53 }
 0xfee   :  { %v1720_v34 = vpop.f32.mrb[38].mxu0 }
 0xfef   :  { %v1725_v28 = vmul.f32 %v1720_v34, %v2636_v55  ;;  %v2128_v35 = vpop.f32.mrb[39].mxu0 }
 0xff1   :  { %v1726_v26 = vpack.c.bf16 %v1725_v28, %v1724_v18 }
 0xff3   :  { %2134 = vmatmul.mubr.msk.bf16.vlgmr.msra.gmra.mrb[40].mxu1 %vm201_vm2, %v1726_v26 }
0x10c6   :  { %v1785_v32 = vpop.f32.mrb[40].mxu1 }
0x10c7   :  { %v1786_v21 = vadd.f32 %v1928_v1, %v1785_v32  ;;  %v2135_v46 = vpop.f32.mrb[41].mxu1 }
0x10c8   :  { %v1788_v6 = vpop.f32.mrb[42].mxu1 }
0x10c9   :  { %v1789_v54 = vadd.f32 %v1928_v1, %v1788_v6  ;;  %v2136_v27 = vpop.f32.mrb[43].mxu1  ;;  %v1794_v20 = vsel %vm201_vm2, %v1786_v21, 0.0 }
0x10ca   :  { %1795 = vadd.xlane.f32.xlu1 %v1794_v20 }
0x10cb   :  { %v1797_v53 = vsel %vm201_vm2, %v1789_v54, 0.0 }
0x10cc   :  { %1798 = vadd.xlane.f32.xlu0 %v1797_v53 }
0x1157   :  { %v1796_v55 = vpop.xlane.xlu1 %1795 }
0x1158   :  { %v1800_v38 = vmul.f32 0.03125, %v1796_v55 }
0x1159   :  { %v1799_v29 = vpop.xlane.xlu0 %1798 }
0x115a   :  { %v1802_v24 = vsub.f32 %v1786_v21, %v1800_v38  ;;  %v1801_v31 = vmul.f32 0.03125, %v1799_v29 }
0x115c   :  { %v1803_v33 = vsub.f32 %v1789_v54, %v1801_v31  ;;  %v1804_v45 = vmul.f32 %v1802_v24, %v1802_v24 }
0x115e   :  { %v1806_v5 = vsel %vm201_vm2, %v1804_v45, 0.0  ;;  %v1805_v9 = vmul.f32 %v1803_v33, %v1803_v33 }
0x115f   :  { %1807 = vadd.xlane.f32.xlu1 %v1806_v5 }
0x1160   :  { %v1809_v22 = vsel %vm201_vm2, %v1805_v9, 0.0 }
0x1161   :  { %1810 = vadd.xlane.f32.xlu0 %v1809_v22 }
0x11ec   :  { %v1808_v44 = vpop.xlane.xlu1 %1807 }
0x11ed   :  { %v1812_v57 = vmul.f32 0.03125, %v1808_v44 }
0x11ee   :  { %v1811_v47 = vpop.xlane.xlu0 %1810 }
0x11ef   :  { %v1814_v25 = vadd.f32 1e-05, %v1812_v57  ;;  %v1813_v50 = vmul.f32 0.03125, %v1811_v47 }
0x11f1   :  { %2241 = vrsqrt.f32 %v1814_v25  ;;  %v1815_v19 = vadd.f32 1e-05, %v1813_v50 }
0x11f3   :  { %2243 = vrsqrt.f32 %v1815_v19 }
0x11fb   :  { %v2242_v49 = vpop.eup %2241 }
0x11fc   :  { %v1818_v58 = vmul.f32 %v2242_v49, %v1802_v24 }
0x11fd   :  { %v2244_v13 = vpop.eup %2243 }
0x11fe   :  { %v1824_v3 = vmul.f32 %v1932_v56, %v1818_v58  ;;  %v1819_v60 = vmul.f32 %v2244_v13, %v1803_v33 }
0x1200   :  { %v1825_v11 = vmul.f32 %v1932_v56, %v1819_v60  ;;  %v1830_v12 = vadd.f32 %v1933_v59, %v1824_v3 }
0x1202   :  { %v1831_v42 = vadd.f32 %v1933_v59, %v1825_v11  ;;  %v1832_v36 = vmax.f32 %v1830_v12, 0.0 }
0x1204   :  { %v1833_v63 = vmax.f32 %v1831_v42, 0.0  ;;  %v1834_v30 = vadd.f32 %v1832_v36, %v2676_v51 }
0x1206   :  { %v1835_v62 = vadd.f32 %v1833_v63, %v2679_v48  ;;  %1836 = vst.msk [vmem:[#allocation2] sm:$0xff] %vm201_vm2, %v1834_v30 }
0x1208   :  { %1837 = vst.msk [vmem:[#allocation2 + $0x8] sm:$0xff] %vm201_vm2, %v1835_v62 }
0x1209   :  { %2256 = shalt.err (!%p2253_p4)
}
0x120a   :  { %s2257_s24 = scalar_lea.hbm %s2907_s4, 256 }
0x120b   :  { %p2258_p5 = scmp.ne.s32.totalorder %s2907_s4, %s2257_s24  ;;  %p2261_p6 = scmp.lt.u32.totalorder %s2257_s24, %s2907_s4 }
0x120d   :  { %p2263_p7 = pnand %p2261_p6, %p2258_p5 }
0x120f   :  { %2266 = shalt.err (!%p2263_p7)
}
0x1210   :  { %s2274_s28 = smov 128   ;;  %s2275_s29 = smov 8  }
0x1211   :  { %1849 = dma.vmem_to_hbm [thread:$0]  %s1844_s8, 256, %s2907_s4, [#allocation3], %s2274_s28, %s2274_s28, %s2275_s29  }
0x1212   :  { %2267 = dma.done.wait [#allocation3], 256  }
0x1213   :  { %2268 = vsyncadd [#allocation3], 4294967040 }
0x1214   :  { %1853 = vsyncpa [#allocation3], 1 }

</bundles_post_ra>
